<compile_context>
chip_gen: v7x
topology: tpu7x:2x2x1
jax: 0.10.0
libtpu: 0.0.40
codegen_flags: <defaults>
</compile_context>

<pallas_src>
import functools

import jax
import jax.numpy as jnp
from jax.experimental import pallas as pl
from jax.experimental.pallas import tpu as pltpu

KSIZE = 5    # LSTM conv kernel size (stride 1, VALID padding)
UPK = 4      # deconv kernel == stride (non-overlapping pixel-shuffle upsample)
LANE = 128   # TPU lane width


def _round_up(x, m):
    return (x + m - 1) // m * m


def _core_kernel(x_ref, wconv_ref, bconv_ref, cg_ref, wdec_ref, bdec_ref, u_ref,
                 h_ref, c_ref, u_out_ref):
    RC, Wo, C = cg_ref.shape          # rows-per-step, output width, channels
    G4p = bconv_ref.shape[1]          # padded (4*C) gate columns
    row0 = pl.program_id(1) * RC      # first output row of this chunk

    bconv = bconv_ref[...]            # (1, G4p) f32
    bdec = bdec_ref[...]              # (1, Nd)  f32

    @pl.loop(0, RC)
    def _(r):
        i = row0 + r
        # In-VMEM im2col: decompose the 5x5 conv into 25 shifted matmuls
        # accumulated in f32 (no 25x HBM patch expansion).
        acc = jnp.zeros((Wo, G4p), jnp.float32)
        for ky in range(KSIZE):
            xrow = x_ref[i + ky]                          # (W, C) bf16
            for kx in range(KSIZE):
                lhs = xrow[kx:kx + Wo, :]                 # (Wo, C) bf16
                acc = acc + jnp.dot(lhs, wconv_ref[ky * KSIZE + kx],
                                    preferred_element_type=jnp.float32)
        gates = acc + bconv                               # (Wo, G4p) f32
        # Tightly packed gates: [i | f | t | o], each C lanes wide.
        pre_i = gates[:, 0 * C:1 * C]
        pre_f = gates[:, 1 * C:2 * C]
        pre_t = gates[:, 2 * C:3 * C]
        pre_o = gates[:, 3 * C:4 * C]
        # Matches the (oddly named) PyTorch source exactly:
        #   forget_gate = sigmoid(lstm_i(.)), input_gate = sigmoid(lstm_f(.))
        forget_gate = jax.nn.sigmoid(pre_i)
        input_gate = jax.nn.sigmoid(pre_f)
        next_c = cg_ref[r] * forget_gate + input_gate * jnp.tanh(pre_t)
        next_h = jax.nn.sigmoid(pre_o) * jnp.tanh(next_c)
        # ConvTranspose2d(k=4, stride=4): per-pixel matmul to C*16 columns + skip.
        dec = jnp.dot(next_h.astype(wdec_ref.dtype), wdec_ref[...],
                      preferred_element_type=jnp.float32)
        u_out_ref[r] = dec + bdec + u_ref[r]
        h_ref[r] = next_h.astype(h_ref.dtype)             # bf16 store (half traffic)
        c_ref[r] = next_c


def _pick_rc(Ho, Wo, C, Nd, row_block_bytes=12 << 20):
    """Largest Ho-row chunk whose double-buffered streamed blocks
    (cg + u inputs, h + c + u outputs) fit in `row_block_bytes` of VMEM."""
    per_row = Wo * (4 * C + 4 * Nd + 2 * C + 4 * C + 4 * Nd)
    rc = max(1, row_block_bytes // (2 * per_row))
    return int(min(rc, Ho, 512))


def core_forward(params, prev_hg, prev_cg, prev_u, prev_z, v, r, *, rows_per_step=None):
    """All arguments NCHW; returns (next_h, next_c, next_u) in NCHW."""
    lstm_in = jnp.concatenate([prev_hg, v, r, prev_z], axis=1)     # (B, C, H, W)
    B, C, H, W = lstm_in.shape
    Ho, Wo = H - KSIZE + 1, W - KSIZE + 1
    KK = KSIZE * KSIZE
    G4 = 4 * C
    G4p = _round_up(G4, LANE)             # tightly packed gate columns
    Ndec = C * UPK * UPK
    Nd = _round_up(Ndec, LANE)            # deconv / pixel-shuffle columns

    RC = rows_per_step if rows_per_step is not None else _pick_rc(Ho, Wo, C, Nd)
    RC = max(1, min(int(RC), Ho))
    nchunks = pl.cdiv(Ho, RC)
    if (B * nchunks) % 2 == 1 and Ho >= 2:
        # v7x megacore: prefer an even total step count so the two TensorCores
        # get equal work.  No effect on v5e/v6e (single core).
        nchunks = nchunks + 1
        RC = pl.cdiv(Ho, nchunks)
        nchunks = pl.cdiv(Ho, RC)
    Hop = nchunks * RC                    # padded output-row count
    Hx = Hop + KSIZE - 1                  # padded input-row count

    # ---- layout glue (plain JAX) --------------------------------------------
    # NHWC bf16 image; H zero-padded so tail chunks stay in range (padded rows
    # compute defined garbage and are sliced off below).
    x = jnp.transpose(lstm_in, (0, 2, 3, 1)).astype(jnp.bfloat16)
    x = jnp.pad(x, ((0, 0), (0, Hx - H), (0, 0), (0, 0)))

    def gate_taps(w):    # (Cout, Cin, kh, kw) -> (kh*kw, Cin, Cout)
        return jnp.transpose(w, (2, 3, 1, 0)).reshape(KK, C, C)

    wconv = jnp.concatenate(
        [gate_taps(params[f"w_{g}"]) for g in ("i", "f", "t", "o")], axis=-1)
    wconv = jnp.pad(wconv, ((0, 0), (0, 0), (0, G4p - G4))).astype(jnp.bfloat16)
    bconv = jnp.concatenate([params[f"b_{g}"] for g in ("i", "f", "t", "o")])
    bconv = jnp.pad(bconv, (0, G4p - G4)).reshape(1, G4p)

    # ConvTranspose2d weight (Cin, Cout, 4, 4) -> (Cin, Cout*16); col = co*16+p*4+q
    wdec = params["w_dec"].reshape(C, Ndec)
    wdec = jnp.pad(wdec, ((0, 0), (0, Nd - Ndec))).astype(jnp.bfloat16)
    bdec = jnp.pad(jnp.repeat(params["b_dec"], UPK * UPK), (0, Nd - Ndec))
    bdec = bdec.reshape(1, Nd)

    cg = jnp.transpose(prev_cg, (0, 2, 3, 1))                      # (B, Ho, Wo, C)
    cg = jnp.pad(cg, ((0, 0), (0, Hop - Ho), (0, 0), (0, 0)))
    # TODO(synk): a model-wide (B, Ho, Wo, C*16) u layout would avoid this
    # transpose pair (extra HBM round trip on the largest tensor).
    u = prev_u.reshape(B, C, Ho, UPK, Wo, UPK)
    u = jnp.transpose(u, (0, 2, 4, 1, 3, 5)).reshape(B, Ho, Wo, Ndec)
    u = jnp.pad(u, ((0, 0), (0, Hop - Ho), (0, 0), (0, Nd - Ndec)))

    # ---- Pallas kernel --------------------------------------------------------
    def row_spec(cols):
        return pl.BlockSpec((None, RC, Wo, cols), lambda b, ch: (b, ch, 0, 0))

    cost = pl.CostEstimate(
        flops=2 * B * Hop * Wo * (KK * C * G4 + C * Ndec),
        transcendentals=5 * B * Hop * Wo * C,
        bytes_accessed=int(x.size * 2 + wconv.size * 2 + bconv.size * 4
                           + cg.size * 4 + wdec.size * 2 + bdec.size * 4
                           + u.size * 4
                           + B * Hop * Wo * (2 * C + 4 * C + 4 * Nd)))

    h, c, u_out = pl.pallas_call(
        _core_kernel,
        out_shape=(jax.ShapeDtypeStruct((B, Hop, Wo, C), jnp.bfloat16),
                   jax.ShapeDtypeStruct((B, Hop, Wo, C), jnp.float32),
                   jax.ShapeDtypeStruct((B, Hop, Wo, Nd), jnp.float32)),
        grid=(B, nchunks),
        in_specs=[
            pl.BlockSpec((None, Hx, W, C), lambda b, ch: (b, 0, 0, 0)),   # image (resident per b)
            pl.BlockSpec((KK, C, G4p), lambda b, ch: (0, 0, 0)),          # fused gate weights
            pl.BlockSpec((1, G4p), lambda b, ch: (0, 0)),                 # fused gate biases
            row_spec(C),                                                  # prev cell state
            pl.BlockSpec((C, Nd), lambda b, ch: (0, 0)),                  # deconv weights
            pl.BlockSpec((1, Nd), lambda b, ch: (0, 0)),                  # deconv bias
            row_spec(Nd),                                                 # prev_u skip
        ],
        out_specs=[row_spec(C), row_spec(C), row_spec(Nd)],
        input_output_aliases={6: 2},          # prev_u temp reused for next_u
        compiler_params=pltpu.CompilerParams(
            dimension_semantics=("parallel", "parallel"),
            vmem_limit_bytes=56 * 1024 * 1024),   # safe on v5e/v6e (128M) and v7x (64M)
        cost_estimate=cost,
    )(x, wconv, bconv, cg, wdec, bdec, u)

    # ---- layout glue back to NCHW ---------------------------------------------
    next_h = jnp.transpose(h[:, :Ho], (0, 3, 1, 2)).astype(jnp.float32)
    next_c = jnp.transpose(c[:, :Ho], (0, 3, 1, 2))
    next_u = u_out[:, :Ho, :, :Ndec].reshape(B, Ho, Wo, C, UPK, UPK)
    next_u = jnp.transpose(next_u, (0, 3, 1, 4, 2, 5)).reshape(B, C, Ho * UPK, Wo * UPK)
    return next_h, next_c, next_u


def init_core_params(key, C):
    """Deterministic synthetic init (PyTorch-default-style uniform bounds)."""
    ks = jax.random.split(key, 10)

    def u(k, shape, fan_in):
        bound = 1.0 / float(fan_in) ** 0.5
        return jax.random.uniform(k, shape, jnp.float32, -bound, bound)

    fan_conv = C * KSIZE * KSIZE
    fan_dec = C * UPK * UPK
    params = {}
    for i, g in enumerate(("i", "f", "t", "o")):
        params[f"w_{g}"] = u(ks[2 * i], (C, C, KSIZE, KSIZE), fan_conv)
        params[f"b_{g}"] = u(ks[2 * i + 1], (C,), fan_conv)
    params["w_dec"] = u(ks[8], (C, C, UPK, UPK), fan_dec)   # (Cin, Cout, kh, kw)
    params["b_dec"] = u(ks[9], (C,), fan_dec)
    return params


def core_forward_ref(params, prev_hg, prev_cg, prev_u, prev_z, v, r,
                     matmul_dtype=jnp.float32):
    """Pure-JAX reference (lax convs).  matmul_dtype=bfloat16 mirrors the
    kernel's bf16-input / f32-accumulate matmuls for a numerics-matched check."""
    x = jnp.concatenate([prev_hg, v, r, prev_z], axis=1).astype(matmul_dtype)

    def conv(w, b):
        y = jax.lax.conv_general_dilated(
            x, w.astype(matmul_dtype), (1, 1), "VALID",
            dimension_numbers=("NCHW", "OIHW", "NCHW"),
            preferred_element_type=jnp.float32,
            precision=jax.lax.Precision.HIGHEST)
        return y + b[None, :, None, None]

    forget = jax.nn.sigmoid(conv(params["w_i"], params["b_i"]))
    inp = jax.nn.sigmoid(conv(params["w_f"], params["b_f"]))
    next_c = prev_cg * forget + inp * jnp.tanh(conv(params["w_t"], params["b_t"]))
    next_h = jax.nn.sigmoid(conv(params["w_o"], params["b_o"])) * jnp.tanh(next_c)
    B, C, Ho, Wo = next_h.shape
    dec = jnp.einsum("bcij,cdpq->bdipjq",
                     next_h.astype(matmul_dtype),
                     params["w_dec"].astype(matmul_dtype),
                     preferred_element_type=jnp.float32,
                     precision=jax.lax.Precision.HIGHEST)
    dec = dec.reshape(B, C, Ho * UPK, Wo * UPK) + params["b_dec"][None, :, None, None]
    return next_h, next_c, dec + prev_u


if __name__ == "__main__":
    # Core(in_channels=C): the lstm convs take the 4-way channel concat as input,
    # so each of prev_hg, v, r, prev_z carries C//4 channels.
    C, B, H, W = 8, 2, 16, 16
    Ho, Wo = H - KSIZE + 1, W - KSIZE + 1

    key = jax.random.PRNGKey(0)
    kp, k0, k1, k2, k3, k4, k5 = jax.random.split(key, 7)
    params = init_core_params(kp, C)

    prev_hg = jax.random.normal(k0, (B, C // 4, H, W), jnp.float32)
    v = jax.random.normal(k1, (B, C // 4, H, W), jnp.float32)
    r = jax.random.normal(k2, (B, C // 4, H, W), jnp.float32)
    prev_z = jax.random.normal(k3, (B, C // 4, H, W), jnp.float32)
    prev_cg = jax.random.normal(k4, (B, C, Ho, Wo), jnp.float32)
    prev_u = jax.random.normal(k5, (B, C, Ho * UPK, Wo * UPK), jnp.float32)

    # rows_per_step=8 -> Ho=12 pads to 16 -> a (B=2) x (2-chunk) 4-step grid,
    # exercising both the resident-image revisit and the tail-row padding path.
    fwd = jax.jit(functools.partial(core_forward, rows_per_step=8))
    outs = jax.block_until_ready(fwd(params, prev_hg, prev_cg, prev_u, prev_z, v, r))

    refs_matched = core_forward_ref(params, prev_hg, prev_cg, prev_u, prev_z, v, r,
                                    matmul_dtype=jnp.bfloat16)
    refs_f32 = core_forward_ref(params, prev_hg, prev_cg, prev_u, prev_z, v, r,
                                matmul_dtype=jnp.float32)
    for o, rm, rf in zip(outs, refs_matched, refs_f32):
        assert o.shape == rf.shape and o.dtype == rf.dtype
        # Tight check vs a numerics-matched (bf16-matmul) reference: layout bugs
        # would show up as O(1) errors here.  Bound allows bf16 storage of next_h.
        assert float(jnp.max(jnp.abs(o - rm))) < 1e-2
        # Loose sanity check vs full-f32 PyTorch-equivalent math.
        assert float(jnp.max(jnp.abs(o - rf))) < 6e-2

    print("KERNEL_OK")
</pallas_src>

<mosaic_0001>
module attributes {stable_mosaic.version = 11 : i64} {
  func.func @_core_kernel(%arg0: i32, %arg1: i32, %arg2: memref<1x20x16x8xbf16, #tpu.memory_space<vmem>>, %arg3: memref<25x8x128xbf16, #tpu.memory_space<vmem>>, %arg4: memref<1x128xf32, #tpu.memory_space<vmem>>, %arg5: memref<1x8x12x8xf32, #tpu.memory_space<vmem>>, %arg6: memref<8x128xbf16, #tpu.memory_space<vmem>>, %arg7: memref<1x128xf32, #tpu.memory_space<vmem>>, %arg8: memref<1x8x12x128xf32, #tpu.memory_space<vmem>>, %arg9: memref<1x8x12x8xbf16, #tpu.memory_space<vmem>>, %arg10: memref<1x8x12x8xf32, #tpu.memory_space<vmem>>, %arg11: memref<1x8x12x128xf32, #tpu.memory_space<vmem>>) attributes {dimension_semantics = [#tpu.dimension_semantics<parallel>, #tpu.dimension_semantics<parallel>], iteration_bounds = array<i64: 2, 2>, scalar_prefetch = 0 : i64, scratch_operands = 0 : i64, tpu.core_type = #tpu.core_type<tc>, window_params = [{transform_indices = @transform_0, window_bounds = array<i64: 1, 20, 16, 8>}, {pipeline_mode = #tpu.pipeline_mode<synchronous>, transform_indices = @transform_1, window_bounds = array<i64: 25, 8, 128>}, {pipeline_mode = #tpu.pipeline_mode<synchronous>, transform_indices = @transform_2, window_bounds = array<i64: 1, 128>}, {transform_indices = @transform_3, window_bounds = array<i64: 1, 8, 12, 8>}, {pipeline_mode = #tpu.pipeline_mode<synchronous>, transform_indices = @transform_4, window_bounds = array<i64: 8, 128>}, {pipeline_mode = #tpu.pipeline_mode<synchronous>, transform_indices = @transform_5, window_bounds = array<i64: 1, 128>}, {transform_indices = @transform_6, window_bounds = array<i64: 1, 8, 12, 128>}, {transform_indices = @transform_7, window_bounds = array<i64: 1, 8, 12, 8>}, {transform_indices = @transform_8, window_bounds = array<i64: 1, 8, 12, 8>}, {transform_indices = @transform_9, window_bounds = array<i64: 1, 8, 12, 128>}]} {
    %c8_i32 = arith.constant 8 : i32
    %0 = arith.muli %arg1, %c8_i32 : i32
    %c0 = arith.constant 0 : index
    %c0_0 = arith.constant 0 : index
    %1 = vector.load %arg4[%c0, %c0_0] : memref<1x128xf32, #tpu.memory_space<vmem>>, vector<1x128xf32>
    %c0_1 = arith.constant 0 : index
    %c0_2 = arith.constant 0 : index
    %2 = vector.load %arg7[%c0_1, %c0_2] : memref<1x128xf32, #tpu.memory_space<vmem>>, vector<1x128xf32>
    %c0_i32 = arith.constant 0 : i32
    %c8_i32_3 = arith.constant 8 : i32
    %3 = arith.addi %c0_i32, %c8_i32_3 : i32
    %c1_i32 = arith.constant 1 : i32
    scf.for %arg12 = %c0_i32 to %3 step %c1_i32  : i32 {
      %c1_i32_5 = arith.constant 1 : i32
      %4 = arith.muli %arg12, %c1_i32_5 : i32
      %c0_i32_6 = arith.constant 0 : i32
      %5 = arith.addi %c0_i32_6, %4 : i32
      %6 = arith.addi %0, %5 : i32
      %cst = arith.constant 0.000000e+00 : f32
      %7 = vector.broadcast %cst : f32 to vector<12x128xf32>
      %c0_i32_7 = arith.constant 0 : i32
      %8 = arith.addi %6, %c0_i32_7 : i32
      %c0_8 = arith.constant 0 : index
      %9 = arith.index_cast %8 : i32 to index
      %c0_9 = arith.constant 0 : index
      %c0_10 = arith.constant 0 : index
      %10 = vector.load %arg2[%c0_8, %9, %c0_9, %c0_10] : memref<1x20x16x8xbf16, #tpu.memory_space<vmem>>, vector<1x1x16x8xbf16>
      %11 = vector.shape_cast %10 : vector<1x1x16x8xbf16> to vector<16x8xbf16>
      %12 = vector.extract_strided_slice %11 {offsets = [0, 0], sizes = [12, 8], strides = [1, 1]} : vector<16x8xbf16> to vector<12x8xbf16>
      %c0_11 = arith.constant 0 : index
      %c0_12 = arith.constant 0 : index
      %c0_13 = arith.constant 0 : index
      %13 = vector.load %arg3[%c0_11, %c0_12, %c0_13] : memref<25x8x128xbf16, #tpu.memory_space<vmem>>, vector<1x8x128xbf16>
      %14 = vector.shape_cast %13 : vector<1x8x128xbf16> to vector<8x128xbf16>
      %cst_14 = arith.constant dense<0.000000e+00> : vector<12x128xf32>
      %15 = tpu.matmul %12, %14, %cst_14 {dimension_numbers = #tpu.dot_dimension_numbers<[1], [0], [0], [1], [0, 0, 1, 1], [], []>} : vector<12x8xbf16>, vector<8x128xbf16>, vector<12x128xf32> -> vector<12x128xf32>
      %16 = arith.addf %7, %15 : vector<12x128xf32>
      %17 = vector.extract_strided_slice %11 {offsets = [1, 0], sizes = [12, 8], strides = [1, 1]} : vector<16x8xbf16> to vector<12x8xbf16>
      %c1 = arith.constant 1 : index
      %c0_15 = arith.constant 0 : index
      %c0_16 = arith.constant 0 : index
      %18 = vector.load %arg3[%c1, %c0_15, %c0_16] : memref<25x8x128xbf16, #tpu.memory_space<vmem>>, vector<1x8x128xbf16>
      %19 = vector.shape_cast %18 : vector<1x8x128xbf16> to vector<8x128xbf16>
      %cst_17 = arith.constant dense<0.000000e+00> : vector<12x128xf32>
      %20 = tpu.matmul %17, %19, %cst_17 {dimension_numbers = #tpu.dot_dimension_numbers<[1], [0], [0], [1], [0, 0, 1, 1], [], []>} : vector<12x8xbf16>, vector<8x128xbf16>, vector<12x128xf32> -> vector<12x128xf32>
      %21 = arith.addf %16, %20 : vector<12x128xf32>
      %22 = vector.extract_strided_slice %11 {offsets = [2, 0], sizes = [12, 8], strides = [1, 1]} : vector<16x8xbf16> to vector<12x8xbf16>
      %c2 = arith.constant 2 : index
      %c0_18 = arith.constant 0 : index
      %c0_19 = arith.constant 0 : index
      %23 = vector.load %arg3[%c2, %c0_18, %c0_19] : memref<25x8x128xbf16, #tpu.memory_space<vmem>>, vector<1x8x128xbf16>
      %24 = vector.shape_cast %23 : vector<1x8x128xbf16> to vector<8x128xbf16>
      %cst_20 = arith.constant dense<0.000000e+00> : vector<12x128xf32>
      %25 = tpu.matmul %22, %24, %cst_20 {dimension_numbers = #tpu.dot_dimension_numbers<[1], [0], [0], [1], [0, 0, 1, 1], [], []>} : vector<12x8xbf16>, vector<8x128xbf16>, vector<12x128xf32> -> vector<12x128xf32>
      %26 = arith.addf %21, %25 : vector<12x128xf32>
      %27 = vector.extract_strided_slice %11 {offsets = [3, 0], sizes = [12, 8], strides = [1, 1]} : vector<16x8xbf16> to vector<12x8xbf16>
      %c3 = arith.constant 3 : index
      %c0_21 = arith.constant 0 : index
      %c0_22 = arith.constant 0 : index
      %28 = vector.load %arg3[%c3, %c0_21, %c0_22] : memref<25x8x128xbf16, #tpu.memory_space<vmem>>, vector<1x8x128xbf16>
      %29 = vector.shape_cast %28 : vector<1x8x128xbf16> to vector<8x128xbf16>
      %cst_23 = arith.constant dense<0.000000e+00> : vector<12x128xf32>
      %30 = tpu.matmul %27, %29, %cst_23 {dimension_numbers = #tpu.dot_dimension_numbers<[1], [0], [0], [1], [0, 0, 1, 1], [], []>} : vector<12x8xbf16>, vector<8x128xbf16>, vector<12x128xf32> -> vector<12x128xf32>
      %31 = arith.addf %26, %30 : vector<12x128xf32>
      %32 = vector.extract_strided_slice %11 {offsets = [4, 0], sizes = [12, 8], strides = [1, 1]} : vector<16x8xbf16> to vector<12x8xbf16>
      %c4 = arith.constant 4 : index
      %c0_24 = arith.constant 0 : index
      %c0_25 = arith.constant 0 : index
      %33 = vector.load %arg3[%c4, %c0_24, %c0_25] : memref<25x8x128xbf16, #tpu.memory_space<vmem>>, vector<1x8x128xbf16>
      %34 = vector.shape_cast %33 : vector<1x8x128xbf16> to vector<8x128xbf16>
      %cst_26 = arith.constant dense<0.000000e+00> : vector<12x128xf32>
      %35 = tpu.matmul %32, %34, %cst_26 {dimension_numbers = #tpu.dot_dimension_numbers<[1], [0], [0], [1], [0, 0, 1, 1], [], []>} : vector<12x8xbf16>, vector<8x128xbf16>, vector<12x128xf32> -> vector<12x128xf32>
      %36 = arith.addf %31, %35 : vector<12x128xf32>
      %c1_i32_27 = arith.constant 1 : i32
      %37 = arith.addi %6, %c1_i32_27 : i32
      %c0_28 = arith.constant 0 : index
      %38 = arith.index_cast %37 : i32 to index
      %c0_29 = arith.constant 0 : index
      %c0_30 = arith.constant 0 : index
      %39 = vector.load %arg2[%c0_28, %38, %c0_29, %c0_30] : memref<1x20x16x8xbf16, #tpu.memory_space<vmem>>, vector<1x1x16x8xbf16>
      %40 = vector.shape_cast %39 : vector<1x1x16x8xbf16> to vector<16x8xbf16>
      %41 = vector.extract_strided_slice %40 {offsets = [0, 0], sizes = [12, 8], strides = [1, 1]} : vector<16x8xbf16> to vector<12x8xbf16>
      %c5 = arith.constant 5 : index
      %c0_31 = arith.constant 0 : index
      %c0_32 = arith.constant 0 : index
      %42 = vector.load %arg3[%c5, %c0_31, %c0_32] : memref<25x8x128xbf16, #tpu.memory_space<vmem>>, vector<1x8x128xbf16>
      %43 = vector.shape_cast %42 : vector<1x8x128xbf16> to vector<8x128xbf16>
      %cst_33 = arith.constant dense<0.000000e+00> : vector<12x128xf32>
      %44 = tpu.matmul %41, %43, %cst_33 {dimension_numbers = #tpu.dot_dimension_numbers<[1], [0], [0], [1], [0, 0, 1, 1], [], []>} : vector<12x8xbf16>, vector<8x128xbf16>, vector<12x128xf32> -> vector<12x128xf32>
      %45 = arith.addf %36, %44 : vector<12x128xf32>
      %46 = vector.extract_strided_slice %40 {offsets = [1, 0], sizes = [12, 8], strides = [1, 1]} : vector<16x8xbf16> to vector<12x8xbf16>
      %c6 = arith.constant 6 : index
      %c0_34 = arith.constant 0 : index
      %c0_35 = arith.constant 0 : index
      %47 = vector.load %arg3[%c6, %c0_34, %c0_35] : memref<25x8x128xbf16, #tpu.memory_space<vmem>>, vector<1x8x128xbf16>
      %48 = vector.shape_cast %47 : vector<1x8x128xbf16> to vector<8x128xbf16>
      %cst_36 = arith.constant dense<0.000000e+00> : vector<12x128xf32>
      %49 = tpu.matmul %46, %48, %cst_36 {dimension_numbers = #tpu.dot_dimension_numbers<[1], [0], [0], [1], [0, 0, 1, 1], [], []>} : vector<12x8xbf16>, vector<8x128xbf16>, vector<12x128xf32> -> vector<12x128xf32>
      %50 = arith.addf %45, %49 : vector<12x128xf32>
      %51 = vector.extract_strided_slice %40 {offsets = [2, 0], sizes = [12, 8], strides = [1, 1]} : vector<16x8xbf16> to vector<12x8xbf16>
      %c7 = arith.constant 7 : index
      %c0_37 = arith.constant 0 : index
      %c0_38 = arith.constant 0 : index
      %52 = vector.load %arg3[%c7, %c0_37, %c0_38] : memref<25x8x128xbf16, #tpu.memory_space<vmem>>, vector<1x8x128xbf16>
      %53 = vector.shape_cast %52 : vector<1x8x128xbf16> to vector<8x128xbf16>
      %cst_39 = arith.constant dense<0.000000e+00> : vector<12x128xf32>
      %54 = tpu.matmul %51, %53, %cst_39 {dimension_numbers = #tpu.dot_dimension_numbers<[1], [0], [0], [1], [0, 0, 1, 1], [], []>} : vector<12x8xbf16>, vector<8x128xbf16>, vector<12x128xf32> -> vector<12x128xf32>
      %55 = arith.addf %50, %54 : vector<12x128xf32>
      %56 = vector.extract_strided_slice %40 {offsets = [3, 0], sizes = [12, 8], strides = [1, 1]} : vector<16x8xbf16> to vector<12x8xbf16>
      %c8 = arith.constant 8 : index
      %c0_40 = arith.constant 0 : index
      %c0_41 = arith.constant 0 : index
      %57 = vector.load %arg3[%c8, %c0_40, %c0_41] : memref<25x8x128xbf16, #tpu.memory_space<vmem>>, vector<1x8x128xbf16>
      %58 = vector.shape_cast %57 : vector<1x8x128xbf16> to vector<8x128xbf16>
      %cst_42 = arith.constant dense<0.000000e+00> : vector<12x128xf32>
      %59 = tpu.matmul %56, %58, %cst_42 {dimension_numbers = #tpu.dot_dimension_numbers<[1], [0], [0], [1], [0, 0, 1, 1], [], []>} : vector<12x8xbf16>, vector<8x128xbf16>, vector<12x128xf32> -> vector<12x128xf32>
      %60 = arith.addf %55, %59 : vector<12x128xf32>
      %61 = vector.extract_strided_slice %40 {offsets = [4, 0], sizes = [12, 8], strides = [1, 1]} : vector<16x8xbf16> to vector<12x8xbf16>
      %c9 = arith.constant 9 : index
      %c0_43 = arith.constant 0 : index
      %c0_44 = arith.constant 0 : index
      %62 = vector.load %arg3[%c9, %c0_43, %c0_44] : memref<25x8x128xbf16, #tpu.memory_space<vmem>>, vector<1x8x128xbf16>
      %63 = vector.shape_cast %62 : vector<1x8x128xbf16> to vector<8x128xbf16>
      %cst_45 = arith.constant dense<0.000000e+00> : vector<12x128xf32>
      %64 = tpu.matmul %61, %63, %cst_45 {dimension_numbers = #tpu.dot_dimension_numbers<[1], [0], [0], [1], [0, 0, 1, 1], [], []>} : vector<12x8xbf16>, vector<8x128xbf16>, vector<12x128xf32> -> vector<12x128xf32>
      %65 = arith.addf %60, %64 : vector<12x128xf32>
      %c2_i32 = arith.constant 2 : i32
      %66 = arith.addi %6, %c2_i32 : i32
      %c0_46 = arith.constant 0 : index
      %67 = arith.index_cast %66 : i32 to index
      %c0_47 = arith.constant 0 : index
      %c0_48 = arith.constant 0 : index
      %68 = vector.load %arg2[%c0_46, %67, %c0_47, %c0_48] : memref<1x20x16x8xbf16, #tpu.memory_space<vmem>>, vector<1x1x16x8xbf16>
      %69 = vector.shape_cast %68 : vector<1x1x16x8xbf16> to vector<16x8xbf16>
      %70 = vector.extract_strided_slice %69 {offsets = [0, 0], sizes = [12, 8], strides = [1, 1]} : vector<16x8xbf16> to vector<12x8xbf16>
      %c10 = arith.constant 10 : index
      %c0_49 = arith.constant 0 : index
      %c0_50 = arith.constant 0 : index
      %71 = vector.load %arg3[%c10, %c0_49, %c0_50] : memref<25x8x128xbf16, #tpu.memory_space<vmem>>, vector<1x8x128xbf16>
      %72 = vector.shape_cast %71 : vector<1x8x128xbf16> to vector<8x128xbf16>
      %cst_51 = arith.constant dense<0.000000e+00> : vector<12x128xf32>
      %73 = tpu.matmul %70, %72, %cst_51 {dimension_numbers = #tpu.dot_dimension_numbers<[1], [0], [0], [1], [0, 0, 1, 1], [], []>} : vector<12x8xbf16>, vector<8x128xbf16>, vector<12x128xf32> -> vector<12x128xf32>
      %74 = arith.addf %65, %73 : vector<12x128xf32>
      %75 = vector.extract_strided_slice %69 {offsets = [1, 0], sizes = [12, 8], strides = [1, 1]} : vector<16x8xbf16> to vector<12x8xbf16>
      %c11 = arith.constant 11 : index
      %c0_52 = arith.constant 0 : index
      %c0_53 = arith.constant 0 : index
      %76 = vector.load %arg3[%c11, %c0_52, %c0_53] : memref<25x8x128xbf16, #tpu.memory_space<vmem>>, vector<1x8x128xbf16>
      %77 = vector.shape_cast %76 : vector<1x8x128xbf16> to vector<8x128xbf16>
      %cst_54 = arith.constant dense<0.000000e+00> : vector<12x128xf32>
      %78 = tpu.matmul %75, %77, %cst_54 {dimension_numbers = #tpu.dot_dimension_numbers<[1], [0], [0], [1], [0, 0, 1, 1], [], []>} : vector<12x8xbf16>, vector<8x128xbf16>, vector<12x128xf32> -> vector<12x128xf32>
      %79 = arith.addf %74, %78 : vector<12x128xf32>
      %80 = vector.extract_strided_slice %69 {offsets = [2, 0], sizes = [12, 8], strides = [1, 1]} : vector<16x8xbf16> to vector<12x8xbf16>
      %c12 = arith.constant 12 : index
      %c0_55 = arith.constant 0 : index
      %c0_56 = arith.constant 0 : index
      %81 = vector.load %arg3[%c12, %c0_55, %c0_56] : memref<25x8x128xbf16, #tpu.memory_space<vmem>>, vector<1x8x128xbf16>
      %82 = vector.shape_cast %81 : vector<1x8x128xbf16> to vector<8x128xbf16>
      %cst_57 = arith.constant dense<0.000000e+00> : vector<12x128xf32>
      %83 = tpu.matmul %80, %82, %cst_57 {dimension_numbers = #tpu.dot_dimension_numbers<[1], [0], [0], [1], [0, 0, 1, 1], [], []>} : vector<12x8xbf16>, vector<8x128xbf16>, vector<12x128xf32> -> vector<12x128xf32>
      %84 = arith.addf %79, %83 : vector<12x128xf32>
      %85 = vector.extract_strided_slice %69 {offsets = [3, 0], sizes = [12, 8], strides = [1, 1]} : vector<16x8xbf16> to vector<12x8xbf16>
      %c13 = arith.constant 13 : index
      %c0_58 = arith.constant 0 : index
      %c0_59 = arith.constant 0 : index
      %86 = vector.load %arg3[%c13, %c0_58, %c0_59] : memref<25x8x128xbf16, #tpu.memory_space<vmem>>, vector<1x8x128xbf16>
      %87 = vector.shape_cast %86 : vector<1x8x128xbf16> to vector<8x128xbf16>
      %cst_60 = arith.constant dense<0.000000e+00> : vector<12x128xf32>
      %88 = tpu.matmul %85, %87, %cst_60 {dimension_numbers = #tpu.dot_dimension_numbers<[1], [0], [0], [1], [0, 0, 1, 1], [], []>} : vector<12x8xbf16>, vector<8x128xbf16>, vector<12x128xf32> -> vector<12x128xf32>
      %89 = arith.addf %84, %88 : vector<12x128xf32>
      %90 = vector.extract_strided_slice %69 {offsets = [4, 0], sizes = [12, 8], strides = [1, 1]} : vector<16x8xbf16> to vector<12x8xbf16>
      %c14 = arith.constant 14 : index
      %c0_61 = arith.constant 0 : index
      %c0_62 = arith.constant 0 : index
      %91 = vector.load %arg3[%c14, %c0_61, %c0_62] : memref<25x8x128xbf16, #tpu.memory_space<vmem>>, vector<1x8x128xbf16>
      %92 = vector.shape_cast %91 : vector<1x8x128xbf16> to vector<8x128xbf16>
      %cst_63 = arith.constant dense<0.000000e+00> : vector<12x128xf32>
      %93 = tpu.matmul %90, %92, %cst_63 {dimension_numbers = #tpu.dot_dimension_numbers<[1], [0], [0], [1], [0, 0, 1, 1], [], []>} : vector<12x8xbf16>, vector<8x128xbf16>, vector<12x128xf32> -> vector<12x128xf32>
      %94 = arith.addf %89, %93 : vector<12x128xf32>
      %c3_i32 = arith.constant 3 : i32
      %95 = arith.addi %6, %c3_i32 : i32
      %c0_64 = arith.constant 0 : index
      %96 = arith.index_cast %95 : i32 to index
      %c0_65 = arith.constant 0 : index
      %c0_66 = arith.constant 0 : index
      %97 = vector.load %arg2[%c0_64, %96, %c0_65, %c0_66] : memref<1x20x16x8xbf16, #tpu.memory_space<vmem>>, vector<1x1x16x8xbf16>
      %98 = vector.shape_cast %97 : vector<1x1x16x8xbf16> to vector<16x8xbf16>
      %99 = vector.extract_strided_slice %98 {offsets = [0, 0], sizes = [12, 8], strides = [1, 1]} : vector<16x8xbf16> to vector<12x8xbf16>
      %c15 = arith.constant 15 : index
      %c0_67 = arith.constant 0 : index
      %c0_68 = arith.constant 0 : index
      %100 = vector.load %arg3[%c15, %c0_67, %c0_68] : memref<25x8x128xbf16, #tpu.memory_space<vmem>>, vector<1x8x128xbf16>
      %101 = vector.shape_cast %100 : vector<1x8x128xbf16> to vector<8x128xbf16>
      %cst_69 = arith.constant dense<0.000000e+00> : vector<12x128xf32>
      %102 = tpu.matmul %99, %101, %cst_69 {dimension_numbers = #tpu.dot_dimension_numbers<[1], [0], [0], [1], [0, 0, 1, 1], [], []>} : vector<12x8xbf16>, vector<8x128xbf16>, vector<12x128xf32> -> vector<12x128xf32>
      %103 = arith.addf %94, %102 : vector<12x128xf32>
      %104 = vector.extract_strided_slice %98 {offsets = [1, 0], sizes = [12, 8], strides = [1, 1]} : vector<16x8xbf16> to vector<12x8xbf16>
      %c16 = arith.constant 16 : index
      %c0_70 = arith.constant 0 : index
      %c0_71 = arith.constant 0 : index
      %105 = vector.load %arg3[%c16, %c0_70, %c0_71] : memref<25x8x128xbf16, #tpu.memory_space<vmem>>, vector<1x8x128xbf16>
      %106 = vector.shape_cast %105 : vector<1x8x128xbf16> to vector<8x128xbf16>
      %cst_72 = arith.constant dense<0.000000e+00> : vector<12x128xf32>
      %107 = tpu.matmul %104, %106, %cst_72 {dimension_numbers = #tpu.dot_dimension_numbers<[1], [0], [0], [1], [0, 0, 1, 1], [], []>} : vector<12x8xbf16>, vector<8x128xbf16>, vector<12x128xf32> -> vector<12x128xf32>
      %108 = arith.addf %103, %107 : vector<12x128xf32>
      %109 = vector.extract_strided_slice %98 {offsets = [2, 0], sizes = [12, 8], strides = [1, 1]} : vector<16x8xbf16> to vector<12x8xbf16>
      %c17 = arith.constant 17 : index
      %c0_73 = arith.constant 0 : index
      %c0_74 = arith.constant 0 : index
      %110 = vector.load %arg3[%c17, %c0_73, %c0_74] : memref<25x8x128xbf16, #tpu.memory_space<vmem>>, vector<1x8x128xbf16>
      %111 = vector.shape_cast %110 : vector<1x8x128xbf16> to vector<8x128xbf16>
      %cst_75 = arith.constant dense<0.000000e+00> : vector<12x128xf32>
      %112 = tpu.matmul %109, %111, %cst_75 {dimension_numbers = #tpu.dot_dimension_numbers<[1], [0], [0], [1], [0, 0, 1, 1], [], []>} : vector<12x8xbf16>, vector<8x128xbf16>, vector<12x128xf32> -> vector<12x128xf32>
      %113 = arith.addf %108, %112 : vector<12x128xf32>
      %114 = vector.extract_strided_slice %98 {offsets = [3, 0], sizes = [12, 8], strides = [1, 1]} : vector<16x8xbf16> to vector<12x8xbf16>
      %c18 = arith.constant 18 : index
      %c0_76 = arith.constant 0 : index
      %c0_77 = arith.constant 0 : index
      %115 = vector.load %arg3[%c18, %c0_76, %c0_77] : memref<25x8x128xbf16, #tpu.memory_space<vmem>>, vector<1x8x128xbf16>
      %116 = vector.shape_cast %115 : vector<1x8x128xbf16> to vector<8x128xbf16>
      %cst_78 = arith.constant dense<0.000000e+00> : vector<12x128xf32>
      %117 = tpu.matmul %114, %116, %cst_78 {dimension_numbers = #tpu.dot_dimension_numbers<[1], [0], [0], [1], [0, 0, 1, 1], [], []>} : vector<12x8xbf16>, vector<8x128xbf16>, vector<12x128xf32> -> vector<12x128xf32>
      %118 = arith.addf %113, %117 : vector<12x128xf32>
      %119 = vector.extract_strided_slice %98 {offsets = [4, 0], sizes = [12, 8], strides = [1, 1]} : vector<16x8xbf16> to vector<12x8xbf16>
      %c19 = arith.constant 19 : index
      %c0_79 = arith.constant 0 : index
      %c0_80 = arith.constant 0 : index
      %120 = vector.load %arg3[%c19, %c0_79, %c0_80] : memref<25x8x128xbf16, #tpu.memory_space<vmem>>, vector<1x8x128xbf16>
      %121 = vector.shape_cast %120 : vector<1x8x128xbf16> to vector<8x128xbf16>
      %cst_81 = arith.constant dense<0.000000e+00> : vector<12x128xf32>
      %122 = tpu.matmul %119, %121, %cst_81 {dimension_numbers = #tpu.dot_dimension_numbers<[1], [0], [0], [1], [0, 0, 1, 1], [], []>} : vector<12x8xbf16>, vector<8x128xbf16>, vector<12x128xf32> -> vector<12x128xf32>
      %123 = arith.addf %118, %122 : vector<12x128xf32>
      %c4_i32 = arith.constant 4 : i32
      %124 = arith.addi %6, %c4_i32 : i32
      %c0_82 = arith.constant 0 : index
      %125 = arith.index_cast %124 : i32 to index
      %c0_83 = arith.constant 0 : index
      %c0_84 = arith.constant 0 : index
      %126 = vector.load %arg2[%c0_82, %125, %c0_83, %c0_84] : memref<1x20x16x8xbf16, #tpu.memory_space<vmem>>, vector<1x1x16x8xbf16>
      %127 = vector.shape_cast %126 : vector<1x1x16x8xbf16> to vector<16x8xbf16>
      %128 = vector.extract_strided_slice %127 {offsets = [0, 0], sizes = [12, 8], strides = [1, 1]} : vector<16x8xbf16> to vector<12x8xbf16>
      %c20 = arith.constant 20 : index
      %c0_85 = arith.constant 0 : index
      %c0_86 = arith.constant 0 : index
      %129 = vector.load %arg3[%c20, %c0_85, %c0_86] : memref<25x8x128xbf16, #tpu.memory_space<vmem>>, vector<1x8x128xbf16>
      %130 = vector.shape_cast %129 : vector<1x8x128xbf16> to vector<8x128xbf16>
      %cst_87 = arith.constant dense<0.000000e+00> : vector<12x128xf32>
      %131 = tpu.matmul %128, %130, %cst_87 {dimension_numbers = #tpu.dot_dimension_numbers<[1], [0], [0], [1], [0, 0, 1, 1], [], []>} : vector<12x8xbf16>, vector<8x128xbf16>, vector<12x128xf32> -> vector<12x128xf32>
      %132 = arith.addf %123, %131 : vector<12x128xf32>
      %133 = vector.extract_strided_slice %127 {offsets = [1, 0], sizes = [12, 8], strides = [1, 1]} : vector<16x8xbf16> to vector<12x8xbf16>
      %c21 = arith.constant 21 : index
      %c0_88 = arith.constant 0 : index
      %c0_89 = arith.constant 0 : index
      %134 = vector.load %arg3[%c21, %c0_88, %c0_89] : memref<25x8x128xbf16, #tpu.memory_space<vmem>>, vector<1x8x128xbf16>
      %135 = vector.shape_cast %134 : vector<1x8x128xbf16> to vector<8x128xbf16>
      %cst_90 = arith.constant dense<0.000000e+00> : vector<12x128xf32>
      %136 = tpu.matmul %133, %135, %cst_90 {dimension_numbers = #tpu.dot_dimension_numbers<[1], [0], [0], [1], [0, 0, 1, 1], [], []>} : vector<12x8xbf16>, vector<8x128xbf16>, vector<12x128xf32> -> vector<12x128xf32>
      %137 = arith.addf %132, %136 : vector<12x128xf32>
      %138 = vector.extract_strided_slice %127 {offsets = [2, 0], sizes = [12, 8], strides = [1, 1]} : vector<16x8xbf16> to vector<12x8xbf16>
      %c22 = arith.constant 22 : index
      %c0_91 = arith.constant 0 : index
      %c0_92 = arith.constant 0 : index
      %139 = vector.load %arg3[%c22, %c0_91, %c0_92] : memref<25x8x128xbf16, #tpu.memory_space<vmem>>, vector<1x8x128xbf16>
      %140 = vector.shape_cast %139 : vector<1x8x128xbf16> to vector<8x128xbf16>
      %cst_93 = arith.constant dense<0.000000e+00> : vector<12x128xf32>
      %141 = tpu.matmul %138, %140, %cst_93 {dimension_numbers = #tpu.dot_dimension_numbers<[1], [0], [0], [1], [0, 0, 1, 1], [], []>} : vector<12x8xbf16>, vector<8x128xbf16>, vector<12x128xf32> -> vector<12x128xf32>
      %142 = arith.addf %137, %141 : vector<12x128xf32>
      %143 = vector.extract_strided_slice %127 {offsets = [3, 0], sizes = [12, 8], strides = [1, 1]} : vector<16x8xbf16> to vector<12x8xbf16>
      %c23 = arith.constant 23 : index
      %c0_94 = arith.constant 0 : index
      %c0_95 = arith.constant 0 : index
      %144 = vector.load %arg3[%c23, %c0_94, %c0_95] : memref<25x8x128xbf16, #tpu.memory_space<vmem>>, vector<1x8x128xbf16>
      %145 = vector.shape_cast %144 : vector<1x8x128xbf16> to vector<8x128xbf16>
      %cst_96 = arith.constant dense<0.000000e+00> : vector<12x128xf32>
      %146 = tpu.matmul %143, %145, %cst_96 {dimension_numbers = #tpu.dot_dimension_numbers<[1], [0], [0], [1], [0, 0, 1, 1], [], []>} : vector<12x8xbf16>, vector<8x128xbf16>, vector<12x128xf32> -> vector<12x128xf32>
      %147 = arith.addf %142, %146 : vector<12x128xf32>
      %148 = vector.extract_strided_slice %127 {offsets = [4, 0], sizes = [12, 8], strides = [1, 1]} : vector<16x8xbf16> to vector<12x8xbf16>
      %c24 = arith.constant 24 : index
      %c0_97 = arith.constant 0 : index
      %c0_98 = arith.constant 0 : index
      %149 = vector.load %arg3[%c24, %c0_97, %c0_98] : memref<25x8x128xbf16, #tpu.memory_space<vmem>>, vector<1x8x128xbf16>
      %150 = vector.shape_cast %149 : vector<1x8x128xbf16> to vector<8x128xbf16>
      %cst_99 = arith.constant dense<0.000000e+00> : vector<12x128xf32>
      %151 = tpu.matmul %148, %150, %cst_99 {dimension_numbers = #tpu.dot_dimension_numbers<[1], [0], [0], [1], [0, 0, 1, 1], [], []>} : vector<12x8xbf16>, vector<8x128xbf16>, vector<12x128xf32> -> vector<12x128xf32>
      %152 = arith.addf %147, %151 : vector<12x128xf32>
      %153 = vector.broadcast %1 : vector<1x128xf32> to vector<12x128xf32>
      %154 = arith.addf %152, %153 : vector<12x128xf32>
      %155 = vector.extract_strided_slice %154 {offsets = [0, 0], sizes = [12, 8], strides = [1, 1]} : vector<12x128xf32> to vector<12x8xf32>
      %156 = vector.extract_strided_slice %154 {offsets = [0, 8], sizes = [12, 8], strides = [1, 1]} : vector<12x128xf32> to vector<12x8xf32>
      %157 = vector.extract_strided_slice %154 {offsets = [0, 16], sizes = [12, 8], strides = [1, 1]} : vector<12x128xf32> to vector<12x8xf32>
      %158 = vector.extract_strided_slice %154 {offsets = [0, 24], sizes = [12, 8], strides = [1, 1]} : vector<12x128xf32> to vector<12x8xf32>
      %159 = arith.negf %155 : vector<12x8xf32>
      %160 = math.exp %159 : vector<12x8xf32>
      %cst_100 = arith.constant 1.000000e+00 : f32
      %161 = vector.broadcast %cst_100 : f32 to vector<12x8xf32>
      %162 = arith.addf %161, %160 : vector<12x8xf32>
      %163 = arith.divf %161, %162 : vector<12x8xf32>
      %164 = arith.negf %156 : vector<12x8xf32>
      %165 = math.exp %164 : vector<12x8xf32>
      %cst_101 = arith.constant 1.000000e+00 : f32
      %166 = vector.broadcast %cst_101 : f32 to vector<12x8xf32>
      %167 = arith.addf %166, %165 : vector<12x8xf32>
      %168 = arith.divf %166, %167 : vector<12x8xf32>
      %c0_102 = arith.constant 0 : index
      %169 = arith.index_cast %5 : i32 to index
      %c0_103 = arith.constant 0 : index
      %c0_104 = arith.constant 0 : index
      %170 = vector.load %arg5[%c0_102, %169, %c0_103, %c0_104] : memref<1x8x12x8xf32, #tpu.memory_space<vmem>>, vector<1x1x12x8xf32>
      %171 = vector.shape_cast %170 : vector<1x1x12x8xf32> to vector<12x8xf32>
      %172 = arith.mulf %171, %163 : vector<12x8xf32>
      %173 = math.tanh %157 : vector<12x8xf32>
      %174 = arith.mulf %168, %173 : vector<12x8xf32>
      %175 = arith.addf %172, %174 : vector<12x8xf32>
      %176 = arith.negf %158 : vector<12x8xf32>
      %177 = math.exp %176 : vector<12x8xf32>
      %cst_105 = arith.constant 1.000000e+00 : f32
      %178 = vector.broadcast %cst_105 : f32 to vector<12x8xf32>
      %179 = arith.addf %178, %177 : vector<12x8xf32>
      %180 = arith.divf %178, %179 : vector<12x8xf32>
      %181 = math.tanh %175 : vector<12x8xf32>
      %182 = arith.mulf %180, %181 : vector<12x8xf32>
      %183 = arith.truncf %182 : vector<12x8xf32> to vector<12x8xbf16>
      %c0_106 = arith.constant 0 : index
      %c0_107 = arith.constant 0 : index
      %184 = vector.load %arg6[%c0_106, %c0_107] : memref<8x128xbf16, #tpu.memory_space<vmem>>, vector<8x128xbf16>
      %cst_108 = arith.constant dense<0.000000e+00> : vector<12x128xf32>
      %185 = tpu.matmul %183, %184, %cst_108 {dimension_numbers = #tpu.dot_dimension_numbers<[1], [0], [0], [1], [0, 0, 1, 1], [], []>} : vector<12x8xbf16>, vector<8x128xbf16>, vector<12x128xf32> -> vector<12x128xf32>
      %186 = vector.broadcast %2 : vector<1x128xf32> to vector<12x128xf32>
      %187 = arith.addf %185, %186 : vector<12x128xf32>
      %c0_109 = arith.constant 0 : index
      %188 = arith.index_cast %5 : i32 to index
      %c0_110 = arith.constant 0 : index
      %c0_111 = arith.constant 0 : index
      %189 = vector.load %arg8[%c0_109, %188, %c0_110, %c0_111] : memref<1x8x12x128xf32, #tpu.memory_space<vmem>>, vector<1x1x12x128xf32>
      %190 = vector.shape_cast %189 : vector<1x1x12x128xf32> to vector<12x128xf32>
      %191 = arith.addf %187, %190 : vector<12x128xf32>
      %c0_112 = arith.constant 0 : index
      %192 = arith.index_cast %5 : i32 to index
      %c0_113 = arith.constant 0 : index
      %c0_114 = arith.constant 0 : index
      %193 = vector.load %arg11[%c0_112, %192, %c0_113, %c0_114] : memref<1x8x12x128xf32, #tpu.memory_space<vmem>>, vector<1x1x12x128xf32>
      %194 = vector.shape_cast %193 : vector<1x1x12x128xf32> to vector<12x128xf32>
      %195 = vector.shape_cast %191 : vector<12x128xf32> to vector<1x1x12x128xf32>
      tpu.vector_store %arg11[%c0_112, %192, %c0_113, %c0_114], %195 {strides = array<i32>} : memref<1x8x12x128xf32, #tpu.memory_space<vmem>>, vector<1x1x12x128xf32>,
      %196 = arith.truncf %182 : vector<12x8xf32> to vector<12x8xbf16>
      %c0_115 = arith.constant 0 : index
      %197 = arith.index_cast %5 : i32 to index
      %c0_116 = arith.constant 0 : index
      %c0_117 = arith.constant 0 : index
      %198 = vector.load %arg9[%c0_115, %197, %c0_116, %c0_117] : memref<1x8x12x8xbf16, #tpu.memory_space<vmem>>, vector<1x1x12x8xbf16>
      %199 = vector.shape_cast %198 : vector<1x1x12x8xbf16> to vector<12x8xbf16>
      %200 = vector.shape_cast %196 : vector<12x8xbf16> to vector<1x1x12x8xbf16>
      tpu.vector_store %arg9[%c0_115, %197, %c0_116, %c0_117], %200 {strides = array<i32>} : memref<1x8x12x8xbf16, #tpu.memory_space<vmem>>, vector<1x1x12x8xbf16>,
      %c0_118 = arith.constant 0 : index
      %201 = arith.index_cast %5 : i32 to index
      %c0_119 = arith.constant 0 : index
      %c0_120 = arith.constant 0 : index
      %202 = vector.load %arg10[%c0_118, %201, %c0_119, %c0_120] : memref<1x8x12x8xf32, #tpu.memory_space<vmem>>, vector<1x1x12x8xf32>
      %203 = vector.shape_cast %202 : vector<1x1x12x8xf32> to vector<12x8xf32>
      %204 = vector.shape_cast %175 : vector<12x8xf32> to vector<1x1x12x8xf32>
      tpu.vector_store %arg10[%c0_118, %201, %c0_119, %c0_120], %204 {strides = array<i32>} : memref<1x8x12x8xf32, #tpu.memory_space<vmem>>, vector<1x1x12x8xf32>,
    }
    %c8_i32_4 = arith.constant 8 : i32
    return
  }
  func.func @transform_0(%arg0: i32, %arg1: i32) -> (i32, i32, i32, i32) {
    %c0_i32 = arith.constant 0 : i32
    %c0_i32_0 = arith.constant 0 : i32
    %c0_i32_1 = arith.constant 0 : i32
    %c0_i32_2 = arith.constant 0 : i32
    return %arg0, %c0_i32, %c0_i32_0, %c0_i32_1 : i32, i32, i32, i32
  }
  func.func @transform_1(%arg0: i32, %arg1: i32) -> (i32, i32, i32) {
    %c0_i32 = arith.constant 0 : i32
    %c0_i32_0 = arith.constant 0 : i32
    %c0_i32_1 = arith.constant 0 : i32
    %c0_i32_2 = arith.constant 0 : i32
    return %c0_i32, %c0_i32_0, %c0_i32_1 : i32, i32, i32
  }
  func.func @transform_2(%arg0: i32, %arg1: i32) -> (i32, i32) {
    %c0_i32 = arith.constant 0 : i32
    %c0_i32_0 = arith.constant 0 : i32
    %c0_i32_1 = arith.constant 0 : i32
    return %c0_i32, %c0_i32_0 : i32, i32
  }
  func.func @transform_3(%arg0: i32, %arg1: i32) -> (i32, i32, i32, i32) {
    %c0_i32 = arith.constant 0 : i32
    %c0_i32_0 = arith.constant 0 : i32
    %c0_i32_1 = arith.constant 0 : i32
    return %arg0, %arg1, %c0_i32, %c0_i32_0 : i32, i32, i32, i32
  }
  func.func @transform_4(%arg0: i32, %arg1: i32) -> (i32, i32) {
    %c0_i32 = arith.constant 0 : i32
    %c0_i32_0 = arith.constant 0 : i32
    %c0_i32_1 = arith.constant 0 : i32
    return %c0_i32, %c0_i32_0 : i32, i32
  }
  func.func @transform_5(%arg0: i32, %arg1: i32) -> (i32, i32) {
    %c0_i32 = arith.constant 0 : i32
    %c0_i32_0 = arith.constant 0 : i32
    %c0_i32_1 = arith.constant 0 : i32
    return %c0_i32, %c0_i32_0 : i32, i32
  }
  func.func @transform_6(%arg0: i32, %arg1: i32) -> (i32, i32, i32, i32) {
    %c0_i32 = arith.constant 0 : i32
    %c0_i32_0 = arith.constant 0 : i32
    %c0_i32_1 = arith.constant 0 : i32
    return %arg0, %arg1, %c0_i32, %c0_i32_0 : i32, i32, i32, i32
  }
  func.func @transform_7(%arg0: i32, %arg1: i32) -> (i32, i32, i32, i32) {
    %c0_i32 = arith.constant 0 : i32
    %c0_i32_0 = arith.constant 0 : i32
    %c0_i32_1 = arith.constant 0 : i32
    return %arg0, %arg1, %c0_i32, %c0_i32_0 : i32, i32, i32, i32
  }
  func.func @transform_8(%arg0: i32, %arg1: i32) -> (i32, i32, i32, i32) {
    %c0_i32 = arith.constant 0 : i32
    %c0_i32_0 = arith.constant 0 : i32
    %c0_i32_1 = arith.constant 0 : i32
    return %arg0, %arg1, %c0_i32, %c0_i32_0 : i32, i32, i32, i32
  }
  func.func @transform_9(%arg0: i32, %arg1: i32) -> (i32, i32, i32, i32) {
    %c0_i32 = arith.constant 0 : i32
    %c0_i32_0 = arith.constant 0 : i32
    %c0_i32_1 = arith.constant 0 : i32
    return %arg0, %arg1, %c0_i32, %c0_i32_0 : i32, i32, i32, i32
  }
}

</mosaic_0001>

<bundles_post_ra>
// kernel: core_forward.1
= control target key start
LH: loop header
LB: loop body
LE: loop exit
PB: predicated region body
PF: predicated region fallthrough
CT: control target
= control target key end

     0   :  { %s2809_s30 = smov 0   ;;  %s2811_s10 = smov 0   ;;  %s3165_s0 = inlined_call_operand.vmem [shape: bf16[2,20,16,8], index: 0, kind: input, shape index: {}]   ;;  %s3166_s1 = inlined_call_operand.vmem [shape: bf16[25,8,128], index: 1, kind: input, shape index: {}]   ;;  %s3167_s2 = inlined_call_operand.vmem [shape: f32[1,128], index: 2, kind: input, shape index: {}]   ;;  %s3168_s3 = inlined_call_operand.vmem [shape: f32[2,16,12,8], index: 3, kind: input, shape index: {}]   ;;  %s3169_s4 = inlined_call_operand.vmem [shape: bf16[8,128], index: 4, kind: input, shape index: {}]   ;;  %s3170_s5 = inlined_call_operand.vmem [shape: f32[1,128], index: 5, kind: input, shape index: {}]   ;;  %s3171_s6 = inlined_call_operand.vmem [shape: f32[2,16,12,128], index: 6, kind: input, shape index: {}, may-alias: {6,9}]   ;;  %s3172_s7 = inlined_call_operand.vmem [shape: bf16[2,16,12,8], index: 7, kind: output, shape index: {0}]   ;;  %s3173_s8 = inlined_call_operand.vmem [shape: f32[2,16,12,8], index: 8, kind: output, shape index: {1}]   ;;  %s3174_s9 = inlined_call_operand.vmem [shape: f32[2,16,12,128], index: 9, kind: output, shape index: {2}, may-alias: {6,9}]  }
   0x1   :  { %3175 = sst [smem:[#allocation3_spill]] %s3165_s0  ;;  %s2813_s11 = smov 0  }
   0x2   :  { %3176 = sst [smem:[#allocation4_spill]] %s3167_s2  ;;  %s2815_s12 = smov 0  }
   0x3   :  { %3177 = sst [smem:[#allocation5_spill]] %s3170_s5  ;;  %s2817_s13 = smov 0  }
   0x4 LB: > { %s29_s14 = sadd.s32 1, %s2740_s11  ;;  %s32_s15 = sadd.s32 1, %s2744_s12  ;;  %s2748_s13 = sphi %s2817_s13, %s20_s13   ;;  %s2744_s12 = sphi %s2815_s12, %s3186_s12   ;;  %s2740_s11 = sphi %s2813_s11, %s3185_s11   ;;  %s2736_s10 = sphi %s2811_s10, %s3184_s10   ;;  %s2732_s30 = sphi %s2809_s30, %s3183_s30  }
   0x5   : > { %p30_p0 = scmp.ge.s32.totalorder %s29_s14, 2  ;;  %p2312_p1 = scmp.ge.s32.totalorder %s2748_s13, 1 }
   0x6   : > { %p346_p2 = scmp.lt.s32.totalorder %s2748_s13, 5 }
   0x7   : > { %s3188_s14 = smov (%p30_p0, %s29_s14), 0  ;;  %s3190_s15 = smov (!%p30_p0, %s32_s15), %s2744_s12 }
   0x8   : > { %p347_p3 = pnand %p2312_p1, %p346_p2  ;;  %p34_p4 = scmp.ge.s32.totalorder %s3190_s15, 2 }
   0x9   : > { %p427_p5 = scmp.lt.s32.totalorder (!%p347_p3), %s2736_s10, 1  ;;  %s2839_s16 = sshll.u32 (!%p347_p3), %s2732_s30, 3 }
   0xa   : > { %s3192_s15 = smov (%p34_p4, %s3190_s15), 0  ;;  %350 = sbr.rel (%p347_p3) target bundleno = 1061 (0x425), region = 48 }
   0xb   : > { %3178 = sst [smem:[#allocation2_spill]] %s3192_s15  ;;  %s3179_s2 = sld [smem:[#allocation4_spill]] (!%p347_p3) }
   0xc   : > { %s3180_s5 = sld [smem:[#allocation5_spill]] (!%p347_p3)  ;;  %p435_p6 = scmp.lt.s32.totalorder (!%p347_p3), %s2839_s16, 15 }
   0xd   : > { %s3181_s0 = sld [smem:[#allocation3_spill]] (!%p347_p3)  ;;  %s2881_s15 = smov (!%p347_p3), 0  }
  0x11   : > { %v2844_v0 = vld [vmem:[%s3179_s2] ss:$0 sm:$0xff]  ;;  %s3194_s10 = smov (!%p427_p5, %s2736_s10), 1 }
  0x12   : > { %v2849_v1 = vld [vmem:[%s3180_s5] ss:$0 sm:$0xff]  ;;  %s436_s21 = scalar_select %p435_p6, %s2839_s16, 15 }
  0x13   : > { %s2631_s22 = smul.u32 160, %s3194_s10  ;;  %s2316_s23 = sshll.u32 %s3194_s10, 5 }
  0x14   : > { %s2315_s24 = sshll.u32 %s436_s21, 1 }
  0x15   : > { %s2856_s27 = scalar_lea.vmem %s3181_s0, %s2631_s22  ;;  %s439_s28 = sadd.s32 %s2316_s23, %s2315_s24 }
  0x16   : > { %s2858_s29 = sshll.u32 %s439_s28, 3  ;;  %s2325_s30 = sshll.u32 %s439_s28, 2 }
  0x17   : > { %s441_s19 = scalar_lea.vmem %s3168_s3, %s2858_s29  ;;  %s452_s21 = scalar_lea.vmem %s3171_s6, %s2858_s29 }
  0x18   : > { %s2871_s22 = scalar_lea.vmem %s3172_s7, %s2325_s30  ;;  %s474_s26 = scalar_lea.vmem %s3173_s8, %s2858_s29 }
  0x19   : > { %s485_s28 = scalar_lea.vmem %s3174_s9, %s2858_s29 }
  0x1a LB: >> { %v2337_v2 = vld [vmem:[%s3166_s1 + $0x4] sm:$0xf]  ;;  %vm522_vm0 = vcmask 1043456   ;;  %v503_v3 = vld [vmem:[%s3166_s1] sm:$0xf]  ;;  %v2754_v4 = vmov 0.0   ;;  %s497_s0 = sadd.s32 %s2752_s15, %s2839_s16  ;;  %s2752_s15 = sphi %s2881_s15, %s496_s15  }
  0x1b   : >> { %2475 = vmatprep.subr.bf16.mxu0 %v2754_v4  ;;  %v524_v5 = vsel %vm522_vm0, %v2337_v2, 0  ;;  %2481 = vmatprep.subr.bf16.mxu1 %v2754_v4  ;;  %v570_v6 = vsel %vm522_vm0, %v503_v3, 0  ;;  %v2343_v7 = vld [vmem:[%s3166_s1 + $0xc] sm:$0xf]  ;;  %vm2755_vm1 = vmmov 0   ;;  %s2419_s10 = sshll.u32 %s497_s0, 3 }
  0x1c   : >> { %2476 = vmatpush3.bf16.msra.mxu0 %v524_v5  ;;  %2482 = vmatpush3.bf16.msra.mxu1 %v570_v6  ;;  %s2907_s25 = scalar_lea.vmem %s2856_s27, %s2419_s10  ;;  %vm518_vm2 = vcmask 64512   ;;  %v674_v9 = vsel %vm522_vm0, %v2343_v7, 0  ;;  %v2341_v12 = vld [vmem:[%s3166_s1 + $0x8] sm:$0xf]  ;;  %v2351_v16 = vld [vmem:[%s3166_s1 + $0x14] sm:$0xf] }
  0x1d   : >> { %2477 = vmatprep.mubr.msk.bf16.mxu0 %vm2755_vm1, %v2754_v4  ;;  %2483 = vmatprep.mubr.msk.bf16.mxu1 %vm2755_vm1, %v2754_v4  ;;  %v2685_v8 = vld [vmem:[%s2907_s25] sm:$0xff]   ;;  %v620_v18 = vsel %vm522_vm0, %v2341_v12, 0  ;;  %v788_v20 = vsel %vm522_vm0, %v2351_v16, 0  ;;  %v2345_v21 = vld [vmem:[%s3166_s1 + $0x10] sm:$0xf]  ;;  %v2686_v25 = vld [vmem:[%s2907_s25 + $0x8] sm:$0xff]  }
  0x1e   : >> { %2487 = vmatprep.subr.bf16.mxu0 %v2754_v4  ;;  %2493 = vmatprep.subr.bf16.mxu1 %v2754_v4  ;;  %v512_v10 = vshrl.u32 %v2685_v8, 16  ;;  %v514_v11 = vshll.u32 %v2685_v8, 16  ;;  %v615_v22 = vrot.slane %v2685_v8, 1  ;;  %v2356_v23 = vld [vmem:[%s3166_s1 + $0x1c] sm:$0xf]  ;;  %v726_v24 = vsel %vm522_vm0, %v2345_v21, 0 }
  0x1f   : >> { %2484 = vmatmul.mubr.msk.bf16.vlgmr.msra.gmra.mrb[0].mxu1 %vm518_vm2, %v2685_v8  ;;  %v897_v26 = vsel %vm522_vm0, %v2356_v23, 0  ;;  %v2354_v27 = vld [vmem:[%s3166_s1 + $0x18] sm:$0xf]  ;;  %v721_v28 = vrot.slane %v2685_v8, 2  ;;  %v837_v29 = vshll.u32 %v2686_v25, 16  ;;  %v892_v32 = vrot.slane %v2686_v25, 1 }
  0x20   : >> { %2494 = vmatpush3.bf16.msra.mxu1 %v674_v9  ;;  %2495 = vmatprep.mubr.msk.bf16.mxu1 %vm2755_vm1, %v2754_v4  ;;  %v516_v13 = vrot.slane %v514_v11, 1  ;;  %v667_v14 = vrot.slane %v512_v10, 1  ;;  %v668_v15 = vrot.slane %v514_v11, 2  ;;  %v2360_v30 = vld [vmem:[%s3166_s1 + $0x24] sm:$0xf]  ;;  %v845_v31 = vsel %vm522_vm0, %v2354_v27, 0 }
  0x21   : >> { %2505 = vmatprep.subr.bf16.mxu1 %v2754_v4  ;;  %v835_v33 = vshrl.u32 %v2686_v25, 16  ;;  %v839_v34 = vrot.slane %v837_v29, 1  ;;  %v1003_v35 = vsel %vm522_vm0, %v2360_v30, 0  ;;  %v2963_v36 = vld [vmem:[%s2907_s25 + $0x10] sm:$0xff]   ;;  %v2358_v37 = vld [vmem:[%s3166_s1 + $0x20] sm:$0xf] }
  0x22   : >> { %v517_v17 = vor.u32 %v516_v13, %v512_v10  ;;  %v669_v19 = vor.u32 %v668_v15, %v667_v14  ;;  %v2369_v39 = vld [vmem:[%s3166_s1 + $0x2c] sm:$0xf]  ;;  %v951_v40 = vsel %vm522_vm0, %v2358_v37, 0  ;;  %v998_v41 = vrot.slane %v2686_v25, 2  ;;  %v2366_v48 = vld [vmem:[%s3166_s1 + $0x28] sm:$0xf] }
  0x23   : >> { %v840_v38 = vor.u32 %v839_v34, %v835_v33  ;;  %v1114_v42 = vshll.u32 %v2963_v36, 16  ;;  %v944_v43 = vrot.slane %v835_v33, 1  ;;  %v945_v44 = vrot.slane %v837_v29, 2  ;;  %v2373_v50 = vld [vmem:[%s3166_s1 + $0x34] sm:$0xf]  ;;  %v2688_v3 = vld [vmem:[%s2907_s25 + $0x18] sm:$0xff]  }
  0x24   : >> { %2478 = vmatmul.mubr.msk.bf16.vlgmr.msra.gmra.mrb[0].mxu0 %vm518_vm2, %v517_v17  ;;  %v1122_v45 = vsel %vm522_vm0, %v2369_v39, 0  ;;  %v1112_v46 = vshrl.u32 %v2963_v36, 16  ;;  %v1065_v51 = vsel %vm522_vm0, %v2366_v48, 0  ;;  %v1228_v53 = vsel %vm522_vm0, %v2373_v50, 0  ;;  %v2371_v56 = vld [vmem:[%s3166_s1 + $0x30] sm:$0xf] }
  0x25   : >> { %2488 = vmatpush3.bf16.msra.mxu0 %v620_v18  ;;  %2489 = vmatprep.mubr.msk.bf16.mxu0 %vm2755_vm1, %v2754_v4  ;;  %v1116_v47 = vrot.slane %v1114_v42, 1  ;;  %v946_v49 = vor.u32 %v945_v44, %v944_v43  ;;  %v1222_v55 = vrot.slane %v1114_v42, 2  ;;  %v2381_v57 = vld [vmem:[%s3166_s1 + $0x3c] sm:$0xf]  ;;  %v1174_v58 = vsel %vm522_vm0, %v2371_v56, 0  ;;  %v2689_v15 = vld [vmem:[%s2907_s25 + $0x20] sm:$0xff]  }
  0x26   : >> { %2499 = vmatprep.subr.bf16.mxu0 %v2754_v4  ;;  %v1221_v54 = vrot.slane %v1112_v46, 1  ;;  %v1342_v60 = vsel %vm522_vm0, %v2381_v57, 0  ;;  %v2375_v61 = vld [vmem:[%s3166_s1 + $0x38] sm:$0xf]  ;;  %v1169_v62 = vrot.slane %v2963_v36, 1  ;;  %v1275_v7 = vrot.slane %v2963_v36, 2 }
  0x27   : >> { %2496 = vmatmul.mubr.msk.bf16.vlgmr.msra.gmra.mrb[4].mxu1 %vm518_vm2, %v669_v19  ;;  %v1117_v52 = vor.u32 %v1116_v47, %v1112_v46  ;;  %v2386_v63 = vld [vmem:[%s3166_s1 + $0x44] sm:$0xf]  ;;  %v1280_v2 = vsel %vm522_vm0, %v2375_v61, 0  ;;  %v2384_v6 = vld [vmem:[%s3166_s1 + $0x40] sm:$0xf]  ;;  %v1391_v8 = vshll.u32 %v2688_v3, 16 }
  0x28   : >> { %2506 = vmatpush3.bf16.msra.mxu1 %v788_v20  ;;  %2507 = vmatprep.mubr.msk.bf16.mxu1 %vm2755_vm1, %v2754_v4  ;;  %v1223_v59 = vor.u32 %v1222_v55, %v1221_v54  ;;  %v1451_v5 = vsel %vm522_vm0, %v2386_v63, 0  ;;  %v2390_v9 = vld [vmem:[%s3166_s1 + $0x4c] sm:$0xf]  ;;  %v1399_v10 = vsel %vm522_vm0, %v2384_v6, 0  ;;  %v1446_v11 = vrot.slane %v2688_v3, 1  ;;  %s2756_s2 = smov 120  }
  0x29   : >> { %2517 = vmatprep.subr.bf16.mxu1 %v2754_v4  ;;  %v1389_v12 = vshrl.u32 %v2688_v3, 16  ;;  %v1393_v13 = vrot.slane %v1391_v8, 1  ;;  %v1557_v14 = vsel %vm522_vm0, %v2390_v9, 0  ;;  %v2388_v16 = vld [vmem:[%s3166_s1 + $0x48] sm:$0xf]  ;;  %v1552_v20 = vrot.slane %v2688_v3, 2 }
  0x2a   : >> { %v2399_v18 = vld [vmem:[%s3166_s1 + $0x54] sm:$0xf]  ;;  %v1505_v19 = vsel %vm522_vm0, %v2388_v16, 0  ;;  %v1668_v21 = vshll.u32 %v2689_v15, 16  ;;  %v1499_v23 = vrot.slane %v1391_v8, 2  ;;  %v1723_v39 = vrot.slane %v2689_v15, 1 }
  0x2b   : >> { %v1394_v17 = vor.u32 %v1393_v13, %v1389_v12  ;;  %v2396_v27 = vld [vmem:[%s3166_s1 + $0x50] sm:$0xf]  ;;  %v2403_v29 = vld [vmem:[%s3166_s1 + $0x5c] sm:$0xf]  ;;  %s3109_s30 = sshll.u32 %s2752_s15, 4  ;;  %vm2018_vm3 = vcmask 60416  }
  0x2c   : >> { %2490 = vmatmul.mubr.msk.bf16.vlgmr.msra.gmra.mrb[4].mxu0 %vm518_vm2, %v615_v22  ;;  %v1498_v22 = vrot.slane %v1389_v12, 1  ;;  %v1619_v30 = vsel %vm522_vm0, %v2396_v27, 0  ;;  %v1776_v34 = vrot.slane %v1668_v21, 2  ;;  %s1900_s0 = scalar_lea.vmem %s441_s19, %s3109_s30  ;;  %s2022_s10 = scalar_lea.vmem %s474_s26, %s3109_s30  ;;  %vm2020_vm4 = vcmask 58368  }
  0x2d   : >> { %2500 = vmatpush3.bf16.msra.mxu0 %v726_v24  ;;  %2501 = vmatprep.mubr.msk.bf16.mxu0 %vm2755_vm1, %v2754_v4  ;;  %v1676_v24 = vsel %vm522_vm0, %v2399_v18, 0  ;;  %s2757_s17 = smov 24   ;;  %s2422_s18 = sshll.u32 %s2752_s15, 3 }
  0x2e   : >> { %2511 = vmatprep.subr.bf16.mxu0 %v2754_v4  ;;  %s2017_s25 = scalar_lea.vmem %s2871_s22, %s2422_s18  ;;  %s1997_s20 = scalar_lea.vmem %s452_s21, %s3109_s30 }
  0x2f   : >> { %2508 = vmatmul.mubr.msk.bf16.vlgmr.msra.gmra.mrb[8].mxu1 %vm518_vm2, %v2686_v25  ;;  %v1666_v25 = vshrl.u32 %v2689_v15, 16  ;;  %s2002_s24 = scalar_lea.vmem %s485_s28, %s3109_s30  ;;  %s496_s15 = sadd.s32 1, %s2752_s15  }
  0x30   : >> { %2518 = vmatpush3.bf16.msra.mxu1 %v897_v26  ;;  %2519 = vmatprep.mubr.msk.bf16.mxu1 %vm2755_vm1, %v2754_v4  ;;  %v1670_v26 = vrot.slane %v1668_v21, 1  ;;  %p493_p7 = scmp.ge.s32.totalorder %s496_s15, 8  }
  0x31   : >> { %2529 = vmatprep.subr.bf16.mxu1 %v2754_v4  ;;  %v1775_v33 = vrot.slane %v1666_v25, 1 }
  0x33   : >> { %v1777_v37 = vor.u32 %v1776_v34, %v1775_v33 }
  0x34   : >> { %2502 = vmatmul.mubr.msk.bf16.vlgmr.msra.gmra.mrb[8].mxu0 %vm518_vm2, %v721_v28  ;;  %v1500_v28 = vor.u32 %v1499_v23, %v1498_v22 }
  0x35   : >> { %2512 = vmatpush3.bf16.msra.mxu0 %v845_v31  ;;  %2513 = vmatprep.mubr.msk.bf16.mxu0 %vm2755_vm1, %v2754_v4  ;;  %v1671_v31 = vor.u32 %v1670_v26, %v1666_v25 }
  0x36   : >> { %2523 = vmatprep.subr.bf16.mxu0 %v2754_v4 }
  0x37   : >> { %2520 = vmatmul.mubr.msk.bf16.vlgmr.msra.gmra.mrb[12].mxu1 %vm518_vm2, %v892_v32  ;;  %v1782_v32 = vsel %vm522_vm0, %v2403_v29, 0 }
  0x38   : >> { %2530 = vmatpush3.bf16.msra.mxu1 %v1003_v35  ;;  %2531 = vmatprep.mubr.msk.bf16.mxu1 %vm2755_vm1, %v2754_v4  ;;  %v2401_v35 = vld [vmem:[%s3166_s1 + $0x58] sm:$0xf] }
  0x39   : >> { %2541 = vmatprep.subr.bf16.mxu1 %v2754_v4 }
  0x3c   : >> { %2514 = vmatmul.mubr.msk.bf16.vlgmr.msra.gmra.mrb[12].mxu0 %vm518_vm2, %v840_v38  ;;  %v2405_v38 = vld [vmem:[%s3166_s1 + $0x60] sm:$0xf] }
  0x3d   : >> { %2524 = vmatpush3.bf16.msra.mxu0 %v951_v40  ;;  %2525 = vmatprep.mubr.msk.bf16.mxu0 %vm2755_vm1, %v2754_v4  ;;  %v1834_v40 = vsel %vm522_vm0, %v2405_v38, 0 }
  0x3e   : >> { %2535 = vmatprep.subr.bf16.mxu0 %v2754_v4 }
  0x3f   : >> { %2532 = vmatmul.mubr.msk.bf16.vlgmr.msra.gmra.mrb[16].mxu1 %vm518_vm2, %v998_v41  ;;  %v1829_v41 = vrot.slane %v2689_v15, 2 }
  0x40   : >> { %2542 = vmatpush3.bf16.msra.mxu1 %v1122_v45  ;;  %2543 = vmatprep.mubr.msk.bf16.mxu1 %vm2755_vm1, %v2754_v4 }
  0x41   : >> { %2553 = vmatprep.subr.bf16.mxu1 %v2754_v4 }
  0x44   : >> { %2526 = vmatmul.mubr.msk.bf16.vlgmr.msra.gmra.mrb[16].mxu0 %vm518_vm2, %v946_v49 }
  0x45   : >> { %2536 = vmatpush3.bf16.msra.mxu0 %v1065_v51  ;;  %2537 = vmatprep.mubr.msk.bf16.mxu0 %vm2755_vm1, %v2754_v4 }
  0x46   : >> { %2547 = vmatprep.subr.bf16.mxu0 %v2754_v4 }
  0x47   : >> { %2544 = vmatmul.mubr.msk.bf16.vlgmr.msra.gmra.mrb[20].mxu1 %vm518_vm2, %v1117_v52 }
  0x48   : >> { %2554 = vmatpush3.bf16.msra.mxu1 %v1228_v53  ;;  %2555 = vmatprep.mubr.msk.bf16.mxu1 %vm2755_vm1, %v2754_v4 }
  0x49   : >> { %2565 = vmatprep.subr.bf16.mxu1 %v2754_v4 }
  0x4c   : >> { %2538 = vmatmul.mubr.msk.bf16.vlgmr.msra.gmra.mrb[20].mxu0 %vm518_vm2, %v2963_v36  ;;  %v1728_v36 = vsel %vm522_vm0, %v2401_v35, 0 }
  0x4d   : >> { %2548 = vmatpush3.bf16.msra.mxu0 %v1174_v58  ;;  %2549 = vmatprep.mubr.msk.bf16.mxu0 %vm2755_vm1, %v2754_v4 }
  0x4e   : >> { %2559 = vmatprep.subr.bf16.mxu0 %v2754_v4 }
  0x4f   : >> { %2556 = vmatmul.mubr.msk.bf16.vlgmr.msra.gmra.mrb[24].mxu1 %vm518_vm2, %v1223_v59 }
  0x50   : >> { %2566 = vmatpush3.bf16.msra.mxu1 %v1342_v60  ;;  %2567 = vmatprep.mubr.msk.bf16.mxu1 %vm2755_vm1, %v2754_v4 }
  0x51   : >> { %2577 = vmatprep.subr.bf16.mxu1 %v2754_v4 }
  0x54   : >> { %2550 = vmatmul.mubr.msk.bf16.vlgmr.msra.gmra.mrb[24].mxu0 %vm518_vm2, %v1169_v62 }
  0x55   : >> { %2560 = vmatpush3.bf16.msra.mxu0 %v1280_v2  ;;  %2561 = vmatprep.mubr.msk.bf16.mxu0 %vm2755_vm1, %v2754_v4 }
  0x56   : >> { %2571 = vmatprep.subr.bf16.mxu0 %v2754_v4 }
  0x57   : >> { %2568 = vmatmul.mubr.msk.bf16.vlgmr.msra.gmra.mrb[28].mxu1 %vm518_vm2, %v2688_v3 }
  0x58   : >> { %2578 = vmatpush3.bf16.msra.mxu1 %v1451_v5  ;;  %2579 = vmatprep.mubr.msk.bf16.mxu1 %vm2755_vm1, %v2754_v4 }
  0x59   : >> { %2589 = vmatprep.subr.bf16.mxu1 %v2754_v4 }
  0x5c   : >> { %2562 = vmatmul.mubr.msk.bf16.vlgmr.msra.gmra.mrb[28].mxu0 %vm518_vm2, %v1275_v7 }
  0x5d   : >> { %2572 = vmatpush3.bf16.msra.mxu0 %v1399_v10  ;;  %2573 = vmatprep.mubr.msk.bf16.mxu0 %vm2755_vm1, %v2754_v4 }
  0x5e   : >> { %2583 = vmatprep.subr.bf16.mxu0 %v2754_v4 }
  0x5f   : >> { %2580 = vmatmul.mubr.msk.bf16.vlgmr.msra.gmra.mrb[32].mxu1 %vm518_vm2, %v1446_v11 }
  0x60   : >> { %2590 = vmatpush3.bf16.msra.mxu1 %v1557_v14  ;;  %2591 = vmatprep.mubr.msk.bf16.mxu1 %vm2755_vm1, %v2754_v4 }
  0x61   : >> { %2601 = vmatprep.subr.bf16.mxu1 %v2754_v4 }
  0x64   : >> { %2574 = vmatmul.mubr.msk.bf16.vlgmr.msra.gmra.mrb[32].mxu0 %vm518_vm2, %v1394_v17 }
  0x65   : >> { %2584 = vmatpush3.bf16.msra.mxu0 %v1505_v19  ;;  %2585 = vmatprep.mubr.msk.bf16.mxu0 %vm2755_vm1, %v2754_v4 }
  0x66   : >> { %2595 = vmatprep.subr.bf16.mxu0 %v2754_v4 }
  0x67   : >> { %2592 = vmatmul.mubr.msk.bf16.vlgmr.msra.gmra.mrb[36].mxu1 %vm518_vm2, %v1552_v20 }
  0x68   : >> { %2602 = vmatpush3.bf16.msra.mxu1 %v1676_v24  ;;  %2603 = vmatprep.mubr.msk.bf16.mxu1 %vm2755_vm1, %v2754_v4 }
  0x69   : >> { %2613 = vmatprep.subr.bf16.mxu1 %v2754_v4 }
  0x6c   : >> { %2586 = vmatmul.mubr.msk.bf16.vlgmr.msra.gmra.mrb[36].mxu0 %vm518_vm2, %v1500_v28 }
  0x6d   : >> { %2596 = vmatpush3.bf16.msra.mxu0 %v1619_v30  ;;  %2597 = vmatprep.mubr.msk.bf16.mxu0 %vm2755_vm1, %v2754_v4 }
  0x6e   : >> { %2607 = vmatprep.subr.bf16.mxu0 %v2754_v4 }
  0x6f   : >> { %2604 = vmatmul.mubr.msk.bf16.vlgmr.msra.gmra.mrb[40].mxu1 %vm518_vm2, %v1671_v31 }
  0x70   : >> { %2614 = vmatpush3.bf16.msra.mxu1 %v1782_v32  ;;  %2615 = vmatprep.mubr.msk.bf16.mxu1 %vm2755_vm1, %v2754_v4 }
  0x71   : >> { %2625 = vmatprep.subr.bf16.mxu1 %v2754_v4 }
  0x74   : >> { %2598 = vmatmul.mubr.msk.bf16.vlgmr.msra.gmra.mrb[40].mxu0 %vm518_vm2, %v2689_v15 }
  0x75   : >> { %2608 = vmatpush3.bf16.msra.mxu0 %v1728_v36  ;;  %2609 = vmatprep.mubr.msk.bf16.mxu0 %vm2755_vm1, %v2754_v4 }
  0x76   : >> { %2619 = vmatprep.subr.bf16.mxu0 %v2754_v4 }
  0x77   : >> { %2616 = vmatmul.mubr.msk.bf16.vlgmr.msra.gmra.mrb[44].mxu1 %vm518_vm2, %v1777_v37 }
  0x78   : >> { %2627 = vmatprep.mubr.msk.bf16.mxu1 %vm2755_vm1, %v2754_v4 }
  0x7c   : >> { %2610 = vmatmul.mubr.msk.bf16.vlgmr.msra.gmra.mrb[44].mxu0 %vm518_vm2, %v1723_v39 }
  0x7d   : >> { %2620 = vmatpush3.bf16.msra.mxu0 %v1834_v40  ;;  %2621 = vmatprep.mubr.msk.bf16.mxu0 %vm2755_vm1, %v2754_v4 }
  0x84   : >> { %2622 = vmatmul.mubr.msk.bf16.vlgmr.msra.gmra.mrb[48].mxu0 %vm518_vm2, %v1829_v41 }
  0xf2   : >> { %v606_v42 = vpop.f32.mrb[0].mxu1 }
  0xf3   : >> { %v2485_v43 = vpop.f32.mrb[1].mxu1 }
  0xf4   : >> { %v609_v44 = vpop.f32.mrb[2].mxu1 }
  0xf5   : >> { %v2486_v45 = vpop.f32.mrb[3].mxu1 }
  0xf7   : >> { %v560_v46 = vpop.f32.mrb[0].mxu0 }
  0xf8   : >> { %v607_v47 = vadd.f32 %v606_v42, %v560_v46  ;;  %v2479_v48 = vpop.f32.mrb[1].mxu0 }
  0xf9   : >> { %v563_v49 = vpop.f32.mrb[2].mxu0 }
  0xfa   : >> { %v710_v50 = vpop.f32.mrb[4].mxu1  ;;  %v610_v51 = vadd.f32 %v609_v44, %v563_v49  ;;  %v2480_v52 = vpop.f32.mrb[3].mxu0 }
  0xfb   : >> { %v2497_v53 = vpop.f32.mrb[5].mxu1 }
  0xfc   : >> { %v713_v54 = vpop.f32.mrb[6].mxu1 }
  0xfd   : >> { %v2498_v55 = vpop.f32.mrb[7].mxu1 }
  0xff   : >> { %v656_v56 = vpop.f32.mrb[4].mxu0 }
 0x100   : >> { %v663_v57 = vadd.f32 %v656_v56, %v607_v47  ;;  %v2491_v4 = vpop.f32.mrb[5].mxu0 }
 0x101   : >> { %v659_v58 = vpop.f32.mrb[6].mxu0 }
 0x102   : >> { %v824_v59 = vpop.f32.mrb[8].mxu1  ;;  %v664_v60 = vadd.f32 %v659_v58, %v610_v51  ;;  %v717_v61 = vadd.f32 %v710_v50, %v663_v57  ;;  %v2492_v62 = vpop.f32.mrb[7].mxu0 }
 0x103   : >> { %v2509_v63 = vpop.f32.mrb[9].mxu1 }
 0x104   : >> { %v827_v2 = vpop.f32.mrb[10].mxu1  ;;  %v718_v3 = vadd.f32 %v713_v54, %v664_v60 }
 0x105   : >> { %v2510_v5 = vpop.f32.mrb[11].mxu1 }
 0x107   : >> { %v762_v6 = vpop.f32.mrb[8].mxu0 }
 0x108   : >> { %v769_v7 = vadd.f32 %v762_v6, %v717_v61  ;;  %v2503_v8 = vpop.f32.mrb[9].mxu0 }
 0x109   : >> { %v765_v9 = vpop.f32.mrb[10].mxu0 }
 0x10a   : >> { %v933_v10 = vpop.f32.mrb[12].mxu1  ;;  %v770_v11 = vadd.f32 %v765_v9, %v718_v3  ;;  %v831_v12 = vadd.f32 %v824_v59, %v769_v7  ;;  %v2504_v13 = vpop.f32.mrb[11].mxu0 }
 0x10b   : >> { %v2521_v14 = vpop.f32.mrb[13].mxu1 }
 0x10c   : >> { %v936_v15 = vpop.f32.mrb[14].mxu1  ;;  %v832_v16 = vadd.f32 %v827_v2, %v770_v11 }
 0x10d   : >> { %v2522_v17 = vpop.f32.mrb[15].mxu1 }
 0x10f   : >> { %v881_v18 = vpop.f32.mrb[12].mxu0 }
 0x110   : >> { %v888_v19 = vadd.f32 %v881_v18, %v831_v12  ;;  %v2515_v20 = vpop.f32.mrb[13].mxu0 }
 0x111   : >> { %v884_v21 = vpop.f32.mrb[14].mxu0 }
 0x112   : >> { %v1039_v22 = vpop.f32.mrb[16].mxu1  ;;  %v889_v23 = vadd.f32 %v884_v21, %v832_v16  ;;  %v940_v24 = vadd.f32 %v933_v10, %v888_v19  ;;  %v2516_v25 = vpop.f32.mrb[15].mxu0 }
 0x113   : >> { %v2533_v26 = vpop.f32.mrb[17].mxu1 }
 0x114   : >> { %v1042_v27 = vpop.f32.mrb[18].mxu1  ;;  %v941_v28 = vadd.f32 %v936_v15, %v889_v23 }
 0x115   : >> { %v2534_v29 = vpop.f32.mrb[19].mxu1 }
 0x117   : >> { %v987_v30 = vpop.f32.mrb[16].mxu0 }
 0x118   : >> { %v994_v31 = vadd.f32 %v987_v30, %v940_v24  ;;  %v2527_v32 = vpop.f32.mrb[17].mxu0 }
 0x119   : >> { %v990_v33 = vpop.f32.mrb[18].mxu0 }
 0x11a   : >> { %v1158_v34 = vpop.f32.mrb[20].mxu1  ;;  %v995_v35 = vadd.f32 %v990_v33, %v941_v28  ;;  %v1046_v36 = vadd.f32 %v1039_v22, %v994_v31  ;;  %v2528_v37 = vpop.f32.mrb[19].mxu0 }
 0x11b   : >> { %v2545_v38 = vpop.f32.mrb[21].mxu1 }
 0x11c   : >> { %v1161_v39 = vpop.f32.mrb[22].mxu1  ;;  %v1047_v40 = vadd.f32 %v1042_v27, %v995_v35 }
 0x11d   : >> { %v2546_v41 = vpop.f32.mrb[23].mxu1 }
 0x11f   : >> { %v1101_v42 = vpop.f32.mrb[20].mxu0 }
 0x120   : >> { %v1108_v43 = vadd.f32 %v1101_v42, %v1046_v36  ;;  %v2539_v44 = vpop.f32.mrb[21].mxu0 }
 0x121   : >> { %v1104_v45 = vpop.f32.mrb[22].mxu0 }
 0x122   : >> { %v1264_v46 = vpop.f32.mrb[24].mxu1  ;;  %v1109_v47 = vadd.f32 %v1104_v45, %v1047_v40  ;;  %v1165_v48 = vadd.f32 %v1158_v34, %v1108_v43  ;;  %v2540_v49 = vpop.f32.mrb[23].mxu0 }
 0x123   : >> { %v2557_v50 = vpop.f32.mrb[25].mxu1 }
 0x124   : >> { %v1267_v51 = vpop.f32.mrb[26].mxu1  ;;  %v1166_v52 = vadd.f32 %v1161_v39, %v1109_v47 }
 0x125   : >> { %v2558_v53 = vpop.f32.mrb[27].mxu1 }
 0x127   : >> { %v1210_v54 = vpop.f32.mrb[24].mxu0 }
 0x128   : >> { %v1217_v55 = vadd.f32 %v1210_v54, %v1165_v48  ;;  %v2551_v56 = vpop.f32.mrb[25].mxu0 }
 0x129   : >> { %v1213_v57 = vpop.f32.mrb[26].mxu0 }
 0x12a   : >> { %v1378_v4 = vpop.f32.mrb[28].mxu1  ;;  %v1218_v58 = vadd.f32 %v1213_v57, %v1166_v52  ;;  %v1271_v59 = vadd.f32 %v1264_v46, %v1217_v55  ;;  %v2552_v60 = vpop.f32.mrb[27].mxu0 }
 0x12b   : >> { %v2569_v61 = vpop.f32.mrb[29].mxu1 }
 0x12c   : >> { %v1381_v62 = vpop.f32.mrb[30].mxu1  ;;  %v1272_v63 = vadd.f32 %v1267_v51, %v1218_v58 }
 0x12d   : >> { %v2570_v2 = vpop.f32.mrb[31].mxu1 }
 0x12f   : >> { %v1316_v3 = vpop.f32.mrb[28].mxu0 }
 0x130   : >> { %v1323_v5 = vadd.f32 %v1316_v3, %v1271_v59  ;;  %v2563_v6 = vpop.f32.mrb[29].mxu0 }
 0x131   : >> { %v1319_v7 = vpop.f32.mrb[30].mxu0 }
 0x132   : >> { %v1487_v8 = vpop.f32.mrb[32].mxu1  ;;  %v1324_v9 = vadd.f32 %v1319_v7, %v1272_v63  ;;  %v1385_v10 = vadd.f32 %v1378_v4, %v1323_v5  ;;  %v2564_v11 = vpop.f32.mrb[31].mxu0 }
 0x133   : >> { %v2581_v12 = vpop.f32.mrb[33].mxu1 }
 0x134   : >> { %v1490_v13 = vpop.f32.mrb[34].mxu1  ;;  %v1386_v14 = vadd.f32 %v1381_v62, %v1324_v9 }
 0x135   : >> { %v2582_v15 = vpop.f32.mrb[35].mxu1 }
 0x137   : >> { %v1435_v16 = vpop.f32.mrb[32].mxu0 }
 0x138   : >> { %v1442_v17 = vadd.f32 %v1435_v16, %v1385_v10  ;;  %v2575_v18 = vpop.f32.mrb[33].mxu0 }
 0x139   : >> { %v1438_v19 = vpop.f32.mrb[34].mxu0 }
 0x13a   : >> { %v1593_v20 = vpop.f32.mrb[36].mxu1  ;;  %v1443_v21 = vadd.f32 %v1438_v19, %v1386_v14  ;;  %v1494_v22 = vadd.f32 %v1487_v8, %v1442_v17  ;;  %v2576_v23 = vpop.f32.mrb[35].mxu0 }
 0x13b   : >> { %v2593_v24 = vpop.f32.mrb[37].mxu1  ;;  %v1902_v23 = vld [vmem:[%s1900_s0 + $0x8] sm:$0xf] }
 0x13c   : >> { %v1596_v25 = vpop.f32.mrb[38].mxu1  ;;  %v1495_v26 = vadd.f32 %v1490_v13, %v1443_v21 }
 0x13d   : >> { %v2594_v27 = vpop.f32.mrb[39].mxu1 }
 0x13f   : >> { %v1541_v28 = vpop.f32.mrb[36].mxu0 }
 0x140   : >> { %v1548_v29 = vadd.f32 %v1541_v28, %v1494_v22  ;;  %v2587_v30 = vpop.f32.mrb[37].mxu0 }
 0x141   : >> { %v1544_v31 = vpop.f32.mrb[38].mxu0 }
 0x142   : >> { %v1712_v32 = vpop.f32.mrb[40].mxu1  ;;  %v1549_v33 = vadd.f32 %v1544_v31, %v1495_v26  ;;  %v1600_v34 = vadd.f32 %v1593_v20, %v1548_v29  ;;  %v2588_v35 = vpop.f32.mrb[39].mxu0  ;;  %v1901_v20 = vld [vmem:[%s1900_s0] sm:$0xff] }
 0x143   : >> { %v2605_v36 = vpop.f32.mrb[41].mxu1  ;;  %v1940_v29 = vld [vmem:[%s3169_s4] sm:$0xf] }
 0x144   : >> { %v1715_v37 = vpop.f32.mrb[42].mxu1  ;;  %v1601_v38 = vadd.f32 %v1596_v25, %v1549_v33  ;;  %v1954_v30 = vsel %vm522_vm0, %v1940_v29, 0 }
 0x145   : >> { %v2606_v39 = vpop.f32.mrb[43].mxu1  ;;  %2626 = vmatpush3.bf16.msra.mxu1 %v1954_v30 }
 0x147   : >> { %v1655_v40 = vpop.f32.mrb[40].mxu0 }
 0x148   : >> { %v1662_v41 = vadd.f32 %v1655_v40, %v1600_v34  ;;  %v2599_v42 = vpop.f32.mrb[41].mxu0 }
 0x149   : >> { %v1658_v43 = vpop.f32.mrb[42].mxu0 }
 0x14a   : >> { %v1818_v44 = vpop.f32.mrb[44].mxu1  ;;  %v1663_v45 = vadd.f32 %v1658_v43, %v1601_v38  ;;  %v1719_v46 = vadd.f32 %v1712_v32, %v1662_v41  ;;  %v2600_v47 = vpop.f32.mrb[43].mxu0  ;;  %v1998_v43 = vld [vmem:[%s1997_s20] sm:$0xff] }
 0x14b   : >> { %v2617_v48 = vpop.f32.mrb[45].mxu1  ;;  %v1999_v47 = vld [vmem:[%s1997_s20 + $0x8] sm:$0xf] }
 0x14c   : >> { %v1821_v49 = vpop.f32.mrb[46].mxu1  ;;  %v1720_v50 = vadd.f32 %v1715_v37, %v1663_v45 }
 0x14d   : >> { %v2618_v51 = vpop.f32.mrb[47].mxu1 }
 0x14f   : >> { %v1764_v52 = vpop.f32.mrb[44].mxu0 }
 0x150   : >> { %v1771_v53 = vadd.f32 %v1764_v52, %v1719_v46  ;;  %v2611_v54 = vpop.f32.mrb[45].mxu0 }
 0x151   : >> { %v1767_v55 = vpop.f32.mrb[46].mxu0 }
 0x152   : >> { %v1772_v56 = vadd.f32 %v1767_v55, %v1720_v50  ;;  %v1825_v57 = vadd.f32 %v1818_v44, %v1771_v53  ;;  %v2612_v4 = vpop.f32.mrb[47].mxu0 }
 0x154   : >> { %v1826_v58 = vadd.f32 %v1821_v49, %v1772_v56 }
 0x157   : >> { %v1870_v59 = vpop.f32.mrb[48].mxu0 }
 0x158   : >> { %v1877_v60 = vadd.f32 %v1870_v59, %v1825_v57  ;;  %v2623_v61 = vpop.f32.mrb[49].mxu0 }
 0x159   : >> { %v1873_v62 = vpop.f32.mrb[50].mxu0 }
 0x15a   : >> { %v1885_v63 = vadd.f32 %v2844_v0, %v1877_v60  ;;  %v1878_v2 = vadd.f32 %v1873_v62, %v1826_v58  ;;  %v2624_v3 = vpop.f32.mrb[51].mxu0 }
 0x15c   : >> { %2690 = vtanh.f32 %v1885_v63  ;;  %v1886_v5 = vadd.f32 %v2844_v0, %v1878_v2  ;;  %v2408_v8 = vmul.f32 -1.442695, %v1885_v63 }
 0x15e   : >> { %2692 = vtanh.f32 %v1886_v5  ;;  %v2409_v9 = vmul.f32 -1.442695, %v1886_v5 }
 0x15f   : >> { %2694 = vpow2.f32 %v2408_v8 }
 0x160   : >> { %2696 = vpow2.f32 %v2409_v9 }
 0x166   : >> { %v2691_v6 = vpop.eup %2690 }
 0x167   : >> { %1909 = vrot.lane.b32.xlu0 %v2691_v6, %s2756_s2 }
 0x168   : >> { %v2693_v7 = vpop.eup %2692 }
 0x169   : >> { %v2695_v10 = vpop.eup %2694 }
 0x16a   : >> { %v1893_v11 = vadd.f32 1.0, %v2695_v10  ;;  %v2697_v12 = vpop.eup %2696 }
 0x16b   : >> { %1911 = vrot.lane.b32.xlu0 %v2693_v7, %s2756_s2  ;;  %v1894_v13 = vadd.f32 1.0, %v2697_v12 }
 0x16c   : >> { %2698 = vrcp.f32 %v1893_v11 }
 0x16d   : >> { %2700 = vrcp.f32 %v1894_v13 }
 0x176   : >> { %v2699_v14 = vpop.eup %2698 }
 0x177   : >> { %v2701_v17 = vpop.eup %2700  ;;  %v1903_v21 = vmul.f32 %v2699_v14, %v1901_v20 }
 0x178   : >> { %v1904_v25 = vmul.f32 %v2701_v17, %v1902_v23 }
 0x1d9   : >> { %v1910_v15 = vpop.permute.xlu0 %1909 }
 0x1da   : >> { %v1915_v16 = vmul.f32 %v2699_v14, %v1910_v15 }
 0x1dc   : >> { %1919 = vrot.lane.b32.xlu1 %v1915_v16, %s2756_s2 }
 0x1dd   : >> { %v1912_v18 = vpop.permute.xlu0 %1911 }
 0x1de   : >> { %v1916_v19 = vmul.f32 %v2701_v17, %v1912_v18 }
 0x1e0   : >> { %1921 = vrot.lane.b32.xlu1 %v1916_v19, %s2756_s2  ;;  %s2758_s2 = smov 104  }
 0x24e   : >> { %v1920_v22 = vpop.permute.xlu1 %1919 }
 0x24f   : >> { %v1925_v24 = vadd.f32 %v1920_v22, %v1903_v21 }
 0x251   : >> { %2702 = vtanh.f32 %v1925_v24  ;;  %2023 = vst.msk [vmem:[%s2022_s10] sm:$0xff] %vm518_vm2, %v1925_v24 }
 0x252   : >> { %v1922_v26 = vpop.permute.xlu1 %1921 }
 0x253   : >> { %v1926_v27 = vadd.f32 %v1922_v26, %v1904_v25 }
 0x255   : >> { %2704 = vtanh.f32 %v1926_v27  ;;  %2024 = vst.msk [vmem:[%s2022_s10 + $0x8] sm:$0xf] %vm2018_vm3, %v1926_v27 }
 0x25b   : >> { %v2703_v28 = vpop.eup %2702 }
 0x25c   : >> { %1931 = vrot.lane.b32.xlu0 %v2703_v28, %s2757_s17 }
 0x25f   : >> { %v2705_v31 = vpop.eup %2704 }
 0x260   : >> { %1933 = vrot.lane.b32.xlu1 %v2705_v31, %s2757_s17 }
 0x2ce   : >> { %v1932_v32 = vpop.permute.xlu0 %1931 }
 0x2cf   : >> { %v1937_v33 = vmul.f32 %v2699_v14, %v1932_v32 }
 0x2d1   : >> { %v2420_v34 = vpack.c.bf16 %v1937_v33, %v1937_v33 }
 0x2d2   : >> { %v1934_v35 = vpop.permute.xlu1 %1933 }
 0x2d3   : >> { %v1938_v36 = vmul.f32 %v2701_v17, %v1934_v35  ;;  %2009 = vrot.lane.b32.xlu1 %v2420_v34, %s2758_s2 }
 0x2d5   : >> { %v1939_v37 = vpack.c.bf16 %v1938_v36, %v1937_v33  ;;  %v2421_v38 = vpack.c.bf16 %v1938_v36, %v1938_v36 }
 0x2d7   : >> { %1948 = vrot.lane.b32.xlu0 %v1939_v37, %s2758_s2 }
 0x2db   : >> { %2011 = vrot.lane.b32.xlu0 %v2421_v38, %s2758_s2 }
 0x345   : >> { %v2010_v39 = vpop.permute.xlu1 %2009 }
 0x346   : >> { %2019 = vst.msk [vmem:[%s2017_s25] sm:$0xf] %vm2018_vm3, %v2010_v39 }
 0x349   : >> { %v1949_v40 = vpop.permute.xlu0 %1948 }
 0x34a   : >> { %2628 = vmatmul.mubr.msk.bf16.vlgmr.msra.gmra.mrb[48].mxu1 %vm518_vm2, %v1949_v40 }
 0x34d   : >> { %v2012_v41 = vpop.permute.xlu0 %2011 }
 0x34e   : >> { %2021 = vst.msk [vmem:[%s2017_s25 + $0x4] sm:$0x3] %vm2020_vm4, %v2012_v41 }
 0x41d   : >> { %v1990_v42 = vpop.f32.mrb[48].mxu1 }
 0x41e   : >> { %v1991_v44 = vadd.f32 %v2849_v1, %v1990_v42  ;;  %v2629_v45 = vpop.f32.mrb[49].mxu1  ;;  %495 = sbr.rel (!%p493_p7) target bundleno = 26 (0x1a), region = 149 }
 0x41f   : >> { %v1993_v46 = vpop.f32.mrb[50].mxu1 }
 0x420   : >> { %v2000_v48 = vadd.f32 %v1998_v43, %v1991_v44  ;;  %v1994_v49 = vadd.f32 %v2849_v1, %v1993_v46  ;;  %v2630_v50 = vpop.f32.mrb[51].mxu1 }
 0x422   : >> { %v2001_v51 = vadd.f32 %v1999_v47, %v1994_v49  ;;  %2003 = vst [vmem:[%s2002_s24] sm:$0xff] %v2000_v48 }
 0x424   : >> { %2004 = vst [vmem:[%s2002_s24 + $0x8] sm:$0xf] %v2001_v51 }
 0x425 PF: > { %s20_s13 = sadd.s32 1, %s2748_s13   ;;  %s3182_s17 = sld [smem:[#allocation2_spill]] }
 0x426   : > { %p17_p8 = scmp.ge.s32.totalorder %s20_s13, 6   ;;  %s3183_s30 = smov %s2740_s11 }
 0x427   : > { %s3184_s10 = smov %s2744_s12  ;;  %s3185_s11 = smov %s3188_s14 }
 0x428   :  { %19 = sbr.rel (!%p17_p8) target bundleno = 4 (0x4), region = 160 }
 0x42b   : > { %s3186_s12 = smov %s3182_s17 }

</bundles_post_ra>
